<compile_context>
chip_gen: v7x
topology: tpu7x:2x2x1
jax: 0.10.0
libtpu: 0.0.40
codegen_flags: <defaults>
</compile_context>

<pallas_src>
import functools

import jax
import jax.numpy as jnp
from jax import lax
from jax.experimental import pallas as pl
from jax.experimental.pallas import tpu as pltpu


# ----------------------------------------------------------------------------
# Pallas: fused pointwise MLP (+ optional max-over-group, + optional logsoftmax)
# ----------------------------------------------------------------------------
def _fused_pointwise_kernel(n_layers, relu_last, reduce_max, log_softmax,
                            x_ref, *refs):
    out_ref = refs[-1]

    if reduce_max:
        g, k, c = x_ref.shape               # block: (tile_g, nsample, Cin)
        h = x_ref[...].reshape(g * k, c)
    else:
        h = x_ref[...]
    h = h.astype(jnp.float32)

    for l in range(n_layers):
        w = refs[2 * l][...]                # bf16 (Cin_l, Cout_l)
        b = refs[2 * l + 1][...]            # f32  (1, Cout_l)  (BN folded in)
        h = jnp.dot(h.astype(jnp.bfloat16), w,
                    preferred_element_type=jnp.float32) + b
        if l < n_layers - 1 or relu_last:
            h = jnp.maximum(h, 0.0)

    if reduce_max:
        h = jnp.max(h.reshape(g, k, h.shape[-1]), axis=1)

    if log_softmax:
        m = jnp.max(h, axis=-1, keepdims=True)
        z = h - m
        lse = jnp.log(jnp.sum(jnp.exp(z), axis=-1, keepdims=True))
        h = z - lse

    out_ref[...] = h.astype(out_ref.dtype)


def _pick_row_tile(rows, cap=1024):
    """Largest power-of-two tile <= cap that divides rows (mult. of 8), else all rows."""
    if rows <= cap:
        return rows
    t = cap
    while t >= 8:
        if rows % t == 0:
            return t
        t //= 2
    return rows


def fused_pointwise_mlp(x, layers, *, relu_last=True, reduce_max=False,
                        log_softmax=False):
    """x: (rows, Cin) or (groups, nsample, Cin) if reduce_max.
    layers: list of (W (Cin,Cout) f32, b (Cout,) f32) with BN already folded."""
    n_layers = len(layers)
    c_out = layers[-1][0].shape[1]

    if reduce_max:
        g, k, c_in = x.shape
        rows = g
    else:
        rows, c_in = x.shape

    tile = _pick_row_tile(rows)
    grid = (rows // tile,)

    if reduce_max:
        x_spec = pl.BlockSpec((tile, k, c_in), lambda i: (i, 0, 0))
    else:
        x_spec = pl.BlockSpec((tile, c_in), lambda i: (i, 0))
    out_spec = pl.BlockSpec((tile, c_out), lambda i: (i, 0))

    in_specs = [x_spec]
    args = [x]
    for w, b in layers:
        w_bf = w.astype(jnp.bfloat16)                  # pre-cast: halves weight DMA
        b2 = b.reshape(1, -1).astype(jnp.float32)
        in_specs.append(pl.BlockSpec(w_bf.shape, lambda i: (0, 0)))
        in_specs.append(pl.BlockSpec(b2.shape, lambda i: (0, 0)))
        args.extend([w_bf, b2])

    kernel = functools.partial(_fused_pointwise_kernel, n_layers, relu_last,
                               reduce_max, log_softmax)

    return pl.pallas_call(
        kernel,
        out_shape=jax.ShapeDtypeStruct((rows, c_out), jnp.float32),
        grid_spec=pltpu.PrefetchScalarGridSpec(
            num_scalar_prefetch=0,
            grid=grid,
            in_specs=in_specs,
            out_specs=out_spec,
        ),
        compiler_params=pltpu.CompilerParams(
            dimension_semantics=("parallel",),
            vmem_limit_bytes=32 * 1024 * 1024,
        ),
    )(*args)


# ----------------------------------------------------------------------------
# Pure-JAX reference for the same fused MLP math (mirrors bf16 matmul inputs)
# ----------------------------------------------------------------------------
def _mlp_jax(x, layers, relu_last=True):
    h = x.astype(jnp.float32)
    n = len(layers)
    for i, (w, b) in enumerate(layers):
        h = jnp.dot(h.astype(jnp.bfloat16), w.astype(jnp.bfloat16),
                    preferred_element_type=jnp.float32) + b.reshape(1, -1)
        if i < n - 1 or relu_last:
            h = jnp.maximum(h, 0.0)
    return h


# ----------------------------------------------------------------------------
# PointNet++ geometric utilities (data-dependent gathers -> plain JAX)
# ----------------------------------------------------------------------------
def square_distance(src, dst):
    # src: (B,N,C), dst: (B,M,C) -> (B,N,M)
    d = -2.0 * jnp.einsum("bnc,bmc->bnm", src, dst)
    d = d + jnp.sum(src ** 2, axis=-1)[:, :, None]
    d = d + jnp.sum(dst ** 2, axis=-1)[:, None, :]
    return d


def index_points(points, idx):
    # points: (B,N,C); idx: (B, ...) int -> (B, ..., C)
    B = points.shape[0]
    batch_idx = jnp.arange(B).reshape((B,) + (1,) * (idx.ndim - 1))
    return points[batch_idx, idx]


def farthest_point_sample(xyz, npoint):
    # Deterministic FPS (seed point = index 0; torch reference uses randint).
    B, N, _ = xyz.shape

    def body(i, state):
        centroids, distance, farthest = state
        centroids = centroids.at[:, i].set(farthest)
        centroid = index_points(xyz, farthest[:, None])          # (B,1,C)
        dist = jnp.sum((xyz - centroid) ** 2, axis=-1)            # (B,N)
        distance = jnp.minimum(distance, dist)
        farthest = jnp.argmax(distance, axis=-1).astype(jnp.int32)
        return centroids, distance, farthest

    centroids0 = jnp.zeros((B, npoint), jnp.int32)
    distance0 = jnp.full((B, N), 1e10, jnp.float32)
    farthest0 = jnp.zeros((B,), jnp.int32)
    centroids, _, _ = lax.fori_loop(0, npoint, body,
                                    (centroids0, distance0, farthest0))
    return centroids


def query_ball_point(radius, nsample, xyz, new_xyz):
    B, N, _ = xyz.shape
    S = new_xyz.shape[1]
    sqrdists = square_distance(new_xyz, xyz)                      # (B,S,N)
    group_idx = jnp.broadcast_to(jnp.arange(N, dtype=jnp.int32), (B, S, N))
    group_idx = jnp.where(sqrdists > radius ** 2, N, group_idx)
    group_idx = jnp.sort(group_idx, axis=-1)[:, :, :nsample]
    group_first = group_idx[:, :, 0:1]
    group_idx = jnp.where(group_idx == N, group_first, group_idx)
    return group_idx


# ----------------------------------------------------------------------------
# PointNet++ modules (feature-last layout throughout)
# ----------------------------------------------------------------------------
def set_abstraction(xyz, points, *, npoint, radius, nsample, group_all,
                    layers, use_pallas):
    # xyz: (B,N,C)  points: (B,N,D) or None
    B, N, C = xyz.shape
    if group_all:
        S, K = 1, N
        new_xyz = jnp.zeros((B, 1, C), xyz.dtype)
        grouped = xyz[:, None, :, :]
        if points is not None:
            grouped = jnp.concatenate([grouped, points[:, None, :, :]], axis=-1)
        new_points = grouped                                       # (B,1,N,C+D)
    else:
        S, K = npoint, nsample
        fps_idx = farthest_point_sample(xyz, npoint)
        new_xyz = index_points(xyz, fps_idx)                       # (B,S,C)
        idx = query_ball_point(radius, nsample, xyz, new_xyz)      # (B,S,K)
        grouped_xyz = index_points(xyz, idx)                       # (B,S,K,C)
        grouped_xyz_norm = grouped_xyz - new_xyz[:, :, None, :]
        if points is not None:
            grouped_points = index_points(points, idx)
            new_points = jnp.concatenate([grouped_xyz_norm, grouped_points],
                                         axis=-1)
        else:
            new_points = grouped_xyz_norm

    c_in = new_points.shape[-1]
    x = new_points.reshape(B * S, K, c_in)
    if use_pallas:
        out = fused_pointwise_mlp(x, layers, relu_last=True, reduce_max=True)
    else:
        h = _mlp_jax(x.reshape(B * S * K, c_in), layers, relu_last=True)
        out = jnp.max(h.reshape(B * S, K, -1), axis=1)
    return new_xyz, out.reshape(B, S, -1)


def feature_propagation(xyz1, xyz2, points1, points2, layers, use_pallas):
    # xyz1: (B,N,C) xyz2: (B,S,C) points1: (B,N,D1)|None points2: (B,S,D2)
    B, N, _ = xyz1.shape
    S = xyz2.shape[1]
    if S == 1:
        interpolated = jnp.broadcast_to(points2, (B, N, points2.shape[-1]))
    else:
        dists = square_distance(xyz1, xyz2)                        # (B,N,S)
        idx = jnp.argsort(dists, axis=-1)[:, :, :3]
        d3 = jnp.take_along_axis(dists, idx, axis=-1)
        dist_recip = 1.0 / (d3 + 1e-8)
        norm = jnp.sum(dist_recip, axis=2, keepdims=True)
        weight = dist_recip / norm
        interpolated = jnp.sum(index_points(points2, idx) * weight[..., None],
                               axis=2)

    if points1 is not None:
        new_points = jnp.concatenate([points1, interpolated], axis=-1)
    else:
        new_points = interpolated

    c_in = new_points.shape[-1]
    x = new_points.reshape(B * N, c_in)
    if use_pallas:
        h = fused_pointwise_mlp(x, layers, relu_last=True)
    else:
        h = _mlp_jax(x, layers, relu_last=True)
    return h.reshape(B, N, -1)


def head(points, layers, use_pallas):
    B, N, c_in = points.shape
    x = points.reshape(B * N, c_in)
    if use_pallas:
        out = fused_pointwise_mlp(x, layers, relu_last=False, log_softmax=True)
    else:
        h = _mlp_jax(x, layers, relu_last=False)
        out = jax.nn.log_softmax(h, axis=-1)
    return out.reshape(B, N, -1)


def pointnet_encoder_forward(x, params, use_pallas=True):
    # x: (B, 5, N) channel-first like the torch module
    xyz = jnp.transpose(x, (0, 2, 1))                              # (B,N,5)
    points = xyz                                                   # l0_points = x

    l1_xyz, l1_points = set_abstraction(xyz, points, npoint=32, radius=0.2,
                                        nsample=8, group_all=False,
                                        layers=params["sa1"], use_pallas=use_pallas)
    l2_xyz, l2_points = set_abstraction(l1_xyz, l1_points, npoint=16, radius=0.4,
                                        nsample=8, group_all=False,
                                        layers=params["sa2"], use_pallas=use_pallas)
    l3_xyz, l3_points = set_abstraction(l2_xyz, l2_points, npoint=None, radius=None,
                                        nsample=None, group_all=True,
                                        layers=params["sa3"], use_pallas=use_pallas)

    l2_points = feature_propagation(l2_xyz, l3_xyz, l2_points, l3_points,
                                    params["fp3"], use_pallas)
    l1_points = feature_propagation(l1_xyz, l2_xyz, l1_points, l2_points,
                                    params["fp2"], use_pallas)
    l0_points = feature_propagation(xyz, l1_xyz, None, l1_points,
                                    params["fp1"], use_pallas)

    return head(l0_points, params["head"], use_pallas)             # (B,N,128)


# ----------------------------------------------------------------------------
# Parameter construction (Conv 1x1 + folded inference-mode BatchNorm)
# ----------------------------------------------------------------------------
def _init_conv_bn(key, cin, cout, with_bn=True):
    k1, k2, k3, k4, k5, k6 = jax.random.split(key, 6)
    bound = 1.0 / (cin ** 0.5)
    w = jax.random.uniform(k1, (cin, cout), jnp.float32, -bound, bound)
    b = jax.random.uniform(k2, (cout,), jnp.float32, -bound, bound)
    if with_bn:
        gamma = jax.random.uniform(k3, (cout,), jnp.float32, 0.8, 1.2)
        beta = jax.random.uniform(k4, (cout,), jnp.float32, -0.1, 0.1)
        mean = 0.1 * jax.random.normal(k5, (cout,), jnp.float32)
        var = jax.random.uniform(k6, (cout,), jnp.float32, 0.8, 1.2)
        scale = gamma / jnp.sqrt(var + 1e-5)
        w = w * scale[None, :]
        b = (b - mean) * scale + beta
    return w, b


def init_params(key):
    def mlp(k, dims, bn_flags=None):
        n = len(dims) - 1
        keys = jax.random.split(k, n)
        return [
            _init_conv_bn(keys[i], dims[i], dims[i + 1],
                          True if bn_flags is None else bn_flags[i])
            for i in range(n)
        ]

    ks = jax.random.split(key, 7)
    return {
        "sa1": mlp(ks[0], [5 + 5, 64, 64, 128]),
        "sa2": mlp(ks[1], [128 + 5, 128, 128, 256]),
        "sa3": mlp(ks[2], [256 + 5, 256, 256, 512]),
        "fp3": mlp(ks[3], [768, 256, 256]),
        "fp2": mlp(ks[4], [384, 256, 128]),
        "fp1": mlp(ks[5], [128, 128, 128, 128]),
        "head": mlp(ks[6], [128, 100, 50, 25, 128],
                    bn_flags=[True, True, True, False]),
    }


# ----------------------------------------------------------------------------
if __name__ == "__main__":
    B, C, N = 2, 5, 64          # x: (B, 5, N) -> output (B, N, k=128)

    key = jax.random.PRNGKey(0)
    kx, kp = jax.random.split(key)
    x = jax.random.normal(kx, (B, C, N), jnp.float32)
    params = init_params(kp)

    out = pointnet_encoder_forward(x, params, use_pallas=True)
    out = jax.block_until_ready(out)

    ref = pointnet_encoder_forward(x, params, use_pallas=False)
    ref = jax.block_until_ready(ref)

    assert out.shape == (B, N, 128), out.shape
    # log_softmax rows must normalize
    assert bool(jnp.allclose(jnp.sum(jnp.exp(out), axis=-1), 1.0, atol=1e-3))
    if not jnp.allclose(out, ref, rtol=2e-3, atol=2e-3):
        raise AssertionError(
            f"mismatch vs reference, max abs err = {jnp.max(jnp.abs(out - ref))}")

    print("KERNEL_OK")
</pallas_src>

<mosaic_0001>
module attributes {stable_mosaic.version = 11 : i64} {
  func.func @_fused_pointwise_kernel(%arg0: i32, %arg1: memref<64x8x10xf32, #tpu.memory_space<vmem>>, %arg2: memref<10x64xbf16, #tpu.memory_space<vmem>>, %arg3: memref<1x64xf32, #tpu.memory_space<vmem>>, %arg4: memref<64x64xbf16, #tpu.memory_space<vmem>>, %arg5: memref<1x64xf32, #tpu.memory_space<vmem>>, %arg6: memref<64x128xbf16, #tpu.memory_space<vmem>>, %arg7: memref<1x128xf32, #tpu.memory_space<vmem>>, %arg8: memref<64x128xf32, #tpu.memory_space<vmem>>) attributes {dimension_semantics = [#tpu.dimension_semantics<parallel>], iteration_bounds = array<i64: 1>, scalar_prefetch = 0 : i64, scratch_operands = 0 : i64, tpu.core_type = #tpu.core_type<tc>, window_params = [{transform_indices = @transform_0, window_bounds = array<i64: 64, 8, 10>}, {pipeline_mode = #tpu.pipeline_mode<synchronous>, transform_indices = @transform_1, window_bounds = array<i64: 10, 64>}, {pipeline_mode = #tpu.pipeline_mode<synchronous>, transform_indices = @transform_2, window_bounds = array<i64: 1, 64>}, {pipeline_mode = #tpu.pipeline_mode<synchronous>, transform_indices = @transform_3, window_bounds = array<i64: 64, 64>}, {pipeline_mode = #tpu.pipeline_mode<synchronous>, transform_indices = @transform_4, window_bounds = array<i64: 1, 64>}, {pipeline_mode = #tpu.pipeline_mode<synchronous>, transform_indices = @transform_5, window_bounds = array<i64: 64, 128>}, {pipeline_mode = #tpu.pipeline_mode<synchronous>, transform_indices = @transform_6, window_bounds = array<i64: 1, 128>}, {transform_indices = @transform_7, window_bounds = array<i64: 64, 128>}]} {
    %c0 = arith.constant 0 : index
    %c0_0 = arith.constant 0 : index
    %c0_1 = arith.constant 0 : index
    %0 = vector.load %arg1[%c0, %c0_0, %c0_1] : memref<64x8x10xf32, #tpu.memory_space<vmem>>, vector<64x8x10xf32>
    %1 = vector.shape_cast %0 : vector<64x8x10xf32> to vector<512x10xf32>
    %c0_2 = arith.constant 0 : index
    %c0_3 = arith.constant 0 : index
    %2 = vector.load %arg2[%c0_2, %c0_3] : memref<10x64xbf16, #tpu.memory_space<vmem>>, vector<10x64xbf16>
    %c0_4 = arith.constant 0 : index
    %c0_5 = arith.constant 0 : index
    %3 = vector.load %arg3[%c0_4, %c0_5] : memref<1x64xf32, #tpu.memory_space<vmem>>, vector<1x64xf32>
    %4 = arith.truncf %1 : vector<512x10xf32> to vector<512x10xbf16>
    %cst = arith.constant dense<0.000000e+00> : vector<512x64xf32>
    %5 = tpu.matmul %4, %2, %cst {dimension_numbers = #tpu.dot_dimension_numbers<[1], [0], [0], [1], [0, 0, 1, 1], [], []>} : vector<512x10xbf16>, vector<10x64xbf16>, vector<512x64xf32> -> vector<512x64xf32>
    %6 = vector.broadcast %3 : vector<1x64xf32> to vector<512x64xf32>
    %7 = arith.addf %5, %6 : vector<512x64xf32>
    %cst_6 = arith.constant 0.000000e+00 : f32
    %8 = vector.broadcast %cst_6 : f32 to vector<512x64xf32>
    %9 = arith.maximumf %7, %8 : vector<512x64xf32>
    %c0_7 = arith.constant 0 : index
    %c0_8 = arith.constant 0 : index
    %10 = vector.load %arg4[%c0_7, %c0_8] : memref<64x64xbf16, #tpu.memory_space<vmem>>, vector<64x64xbf16>
    %c0_9 = arith.constant 0 : index
    %c0_10 = arith.constant 0 : index
    %11 = vector.load %arg5[%c0_9, %c0_10] : memref<1x64xf32, #tpu.memory_space<vmem>>, vector<1x64xf32>
    %12 = arith.truncf %9 : vector<512x64xf32> to vector<512x64xbf16>
    %cst_11 = arith.constant dense<0.000000e+00> : vector<512x64xf32>
    %13 = tpu.matmul %12, %10, %cst_11 {dimension_numbers = #tpu.dot_dimension_numbers<[1], [0], [0], [1], [0, 0, 1, 1], [], []>} : vector<512x64xbf16>, vector<64x64xbf16>, vector<512x64xf32> -> vector<512x64xf32>
    %14 = vector.broadcast %11 : vector<1x64xf32> to vector<512x64xf32>
    %15 = arith.addf %13, %14 : vector<512x64xf32>
    %cst_12 = arith.constant 0.000000e+00 : f32
    %16 = vector.broadcast %cst_12 : f32 to vector<512x64xf32>
    %17 = arith.maximumf %15, %16 : vector<512x64xf32>
    %c0_13 = arith.constant 0 : index
    %c0_14 = arith.constant 0 : index
    %18 = vector.load %arg6[%c0_13, %c0_14] : memref<64x128xbf16, #tpu.memory_space<vmem>>, vector<64x128xbf16>
    %c0_15 = arith.constant 0 : index
    %c0_16 = arith.constant 0 : index
    %19 = vector.load %arg7[%c0_15, %c0_16] : memref<1x128xf32, #tpu.memory_space<vmem>>, vector<1x128xf32>
    %20 = arith.truncf %17 : vector<512x64xf32> to vector<512x64xbf16>
    %cst_17 = arith.constant dense<0.000000e+00> : vector<512x128xf32>
    %21 = tpu.matmul %20, %18, %cst_17 {dimension_numbers = #tpu.dot_dimension_numbers<[1], [0], [0], [1], [0, 0, 1, 1], [], []>} : vector<512x64xbf16>, vector<64x128xbf16>, vector<512x128xf32> -> vector<512x128xf32>
    %22 = vector.broadcast %19 : vector<1x128xf32> to vector<512x128xf32>
    %23 = arith.addf %21, %22 : vector<512x128xf32>
    %cst_18 = arith.constant 0.000000e+00 : f32
    %24 = vector.broadcast %cst_18 : f32 to vector<512x128xf32>
    %25 = arith.maximumf %23, %24 : vector<512x128xf32>
    %26 = vector.shape_cast %25 : vector<512x128xf32> to vector<64x8x128xf32>
    %cst_19 = arith.constant dense<0xFF800000> : vector<64x128xf32>
    %27 = vector.multi_reduction <maximumf>, %26, %cst_19 [1] : vector<64x8x128xf32> to vector<64x128xf32>
    %c0_20 = arith.constant 0 : index
    %c0_21 = arith.constant 0 : index
    %28 = vector.load %arg8[%c0_20, %c0_21] : memref<64x128xf32, #tpu.memory_space<vmem>>, vector<64x128xf32>
    tpu.vector_store %arg8[%c0_20, %c0_21], %27 {strides = array<i32>} : memref<64x128xf32, #tpu.memory_space<vmem>>, vector<64x128xf32>,
    return
  }
  func.func @transform_0(%arg0: i32) -> (i32, i32, i32) {
    %c0_i32 = arith.constant 0 : i32
    %c0_i32_0 = arith.constant 0 : i32
    %c0_i32_1 = arith.constant 0 : i32
    return %arg0, %c0_i32, %c0_i32_0 : i32, i32, i32
  }
  func.func @transform_1(%arg0: i32) -> (i32, i32) {
    %c0_i32 = arith.constant 0 : i32
    %c0_i32_0 = arith.constant 0 : i32
    %c0_i32_1 = arith.constant 0 : i32
    return %c0_i32, %c0_i32_0 : i32, i32
  }
  func.func @transform_2(%arg0: i32) -> (i32, i32) {
    %c0_i32 = arith.constant 0 : i32
    %c0_i32_0 = arith.constant 0 : i32
    %c0_i32_1 = arith.constant 0 : i32
    return %c0_i32, %c0_i32_0 : i32, i32
  }
  func.func @transform_3(%arg0: i32) -> (i32, i32) {
    %c0_i32 = arith.constant 0 : i32
    %c0_i32_0 = arith.constant 0 : i32
    %c0_i32_1 = arith.constant 0 : i32
    return %c0_i32, %c0_i32_0 : i32, i32
  }
  func.func @transform_4(%arg0: i32) -> (i32, i32) {
    %c0_i32 = arith.constant 0 : i32
    %c0_i32_0 = arith.constant 0 : i32
    %c0_i32_1 = arith.constant 0 : i32
    return %c0_i32, %c0_i32_0 : i32, i32
  }
  func.func @transform_5(%arg0: i32) -> (i32, i32) {
    %c0_i32 = arith.constant 0 : i32
    %c0_i32_0 = arith.constant 0 : i32
    %c0_i32_1 = arith.constant 0 : i32
    return %c0_i32, %c0_i32_0 : i32, i32
  }
  func.func @transform_6(%arg0: i32) -> (i32, i32) {
    %c0_i32 = arith.constant 0 : i32
    %c0_i32_0 = arith.constant 0 : i32
    %c0_i32_1 = arith.constant 0 : i32
    return %c0_i32, %c0_i32_0 : i32, i32
  }
  func.func @transform_7(%arg0: i32) -> (i32, i32) {
    %c0_i32 = arith.constant 0 : i32
    %c0_i32_0 = arith.constant 0 : i32
    return %arg0, %c0_i32 : i32, i32
  }
}

</mosaic_0001>

<bundles_post_ra>
// kernel: tpu_custom_call.1
= control target key start
LH: loop header
LB: loop body
LE: loop exit
PB: predicated region body
PF: predicated region fallthrough
CT: control target
= control target key end

     0   :  { %vm235_vm0 = vcmask 1044480   ;;  %vm138_vm1 = vcmask 80896   ;;  %s3322_s0 = inlined_call_operand.vmem [shape: f32[64,8,10], index: 0, kind: input, shape index: {}]   ;;  %s3323_s1 = inlined_call_operand.vmem [shape: bf16[10,64], index: 1, kind: input, shape index: {}]   ;;  %s3324_s2 = inlined_call_operand.vmem [shape: f32[1,64], index: 2, kind: input, shape index: {}]   ;;  %s3325_s3 = inlined_call_operand.vmem [shape: bf16[64,64], index: 3, kind: input, shape index: {}]   ;;  %s3326_s4 = inlined_call_operand.vmem [shape: f32[1,64], index: 4, kind: input, shape index: {}]   ;;  %s3327_s5 = inlined_call_operand.vmem [shape: bf16[64,128], index: 5, kind: input, shape index: {}]   ;;  %s3328_s6 = inlined_call_operand.vmem [shape: f32[1,128], index: 6, kind: input, shape index: {}]   ;;  %s3329_s7 = inlined_call_operand.hbm [shape: f32[64,128], index: 7, kind: output, shape index: {}]  }
   0x1   :  { %v2606_v0 = vld [vmem:[%s3323_s1] sm:$0x1f]   ;;  %v29_v2 = vld [vmem:[%s3322_s0 + $0x8] sm:$0xff]  ;;  %v30_v3 = vld [vmem:[%s3322_s0 + $0x10] sm:$0xff] }
   0x2   :  { %v28_v1 = vld [vmem:[%s3322_s0] sm:$0xff]  ;;  %2601 = vmatprep.subr.msk.bf16.mxu0 %vm235_vm0, %v2606_v0  ;;  %v237_v4 = vsel %vm235_vm0, %v2606_v0, 0  ;;  %v31_v6 = vld [vmem:[%s3322_s0 + $0x18] sm:$0xff]  ;;  %v33_v8 = vld [vmem:[%s3322_s0 + $0x28] sm:$0xff]  ;;  %2602 = vmatprep.subr.msk.bf16.mxu1 %vm235_vm0, %v2606_v0 }
   0x3   :  { %v95_v5 = vpack.c.bf16 %v29_v2, %v28_v1  ;;  %v32_v7 = vld [vmem:[%s3322_s0 + $0x20] sm:$0xff]  ;;  %2390 = vmatpush3.bf16.msra.mxu0 %v237_v4  ;;  %v96_v9 = vpack.c.bf16 %v31_v6, %v30_v3  ;;  %2600 = vmatpush3.bf16.msra.mxu1 %v237_v4  ;;  %v34_v11 = vld [vmem:[%s3322_s0 + $0x30] sm:$0xff]  ;;  %v35_v12 = vld [vmem:[%s3322_s0 + $0x38] sm:$0xff] }
   0x4   :  { %v97_v10 = vpack.c.bf16 %v33_v8, %v32_v7  ;;  %v36_v13 = vld [vmem:[%s3322_s0 + $0x40] sm:$0xff]  ;;  %v37_v14 = vld [vmem:[%s3322_s0 + $0x48] sm:$0xff]  ;;  %v98_v15 = vpack.c.bf16 %v35_v12, %v34_v11  ;;  %v62_v19 = vld [vmem:[%s3322_s0 + $0x110] sm:$0xff] }
   0x5   :  { %2391 = vmatprep.mubr.msk.bf16.mxu0 %vm138_vm1, %v95_v5  ;;  %v99_v16 = vpack.c.bf16 %v37_v14, %v36_v13  ;;  %v60_v17 = vld [vmem:[%s3322_s0 + $0x100] sm:$0xff]  ;;  %v61_v18 = vld [vmem:[%s3322_s0 + $0x108] sm:$0xff]  ;;  %v63_v20 = vld [vmem:[%s3322_s0 + $0x118] sm:$0xff] }
   0x6   :  { %2392 = vmatmul.mubr.msk.bf16.vlgmr.msra.gmra.mrb[0].mxu0 %vm138_vm1, %v96_v9  ;;  %v111_v21 = vpack.c.bf16 %v61_v18, %v60_v17  ;;  %v112_v22 = vpack.c.bf16 %v63_v20, %v62_v19  ;;  %v64_v23 = vld [vmem:[%s3322_s0 + $0x120] sm:$0xff]  ;;  %v65_v24 = vld [vmem:[%s3322_s0 + $0x128] sm:$0xff]  ;;  %v38_v26 = vld [vmem:[%s3322_s0 + $0x50] sm:$0xff] }
   0x7   :  { %2395 = vmatprep.mubr.msk.bf16.mxu0 %vm138_vm1, %v97_v10  ;;  %v113_v25 = vpack.c.bf16 %v65_v24, %v64_v23  ;;  %v39_v27 = vld [vmem:[%s3322_s0 + $0x58] sm:$0xff]  ;;  %v40_v28 = vld [vmem:[%s3322_s0 + $0x60] sm:$0xff]  ;;  %v41_v29 = vld [vmem:[%s3322_s0 + $0x68] sm:$0xff] }
   0x8   :  { %2423 = vmatprep.mubr.msk.bf16.mxu1 %vm138_vm1, %v111_v21  ;;  %v66_v30 = vld [vmem:[%s3322_s0 + $0x130] sm:$0xff]  ;;  %v67_v31 = vld [vmem:[%s3322_s0 + $0x138] sm:$0xff]  ;;  %v100_v32 = vpack.c.bf16 %v39_v27, %v38_v26  ;;  %v68_v33 = vld [vmem:[%s3322_s0 + $0x140] sm:$0xff]  ;;  %v101_v35 = vpack.c.bf16 %v41_v29, %v40_v28 }
   0x9   :  { %2424 = vmatmul.mubr.msk.bf16.vlgmr.msra.gmra.mrb[0].mxu1 %vm138_vm1, %v112_v22  ;;  %v69_v34 = vld [vmem:[%s3322_s0 + $0x148] sm:$0xff]  ;;  %v114_v36 = vpack.c.bf16 %v67_v31, %v66_v30  ;;  %v42_v37 = vld [vmem:[%s3322_s0 + $0x70] sm:$0xff]  ;;  %v43_v38 = vld [vmem:[%s3322_s0 + $0x78] sm:$0xff] }
   0xa   :  { %2427 = vmatprep.mubr.msk.bf16.mxu1 %vm138_vm1, %v113_v25  ;;  %v115_v39 = vpack.c.bf16 %v69_v34, %v68_v33  ;;  %v44_v40 = vld [vmem:[%s3322_s0 + $0x80] sm:$0xff]  ;;  %v45_v41 = vld [vmem:[%s3322_s0 + $0x88] sm:$0xff]  ;;  %v70_v42 = vld [vmem:[%s3322_s0 + $0x150] sm:$0xff]  ;;  %v102_v48 = vpack.c.bf16 %v43_v38, %v42_v37 }
   0xb   :  { %v71_v43 = vld [vmem:[%s3322_s0 + $0x158] sm:$0xff]  ;;  %v2607_v44 = vld [vmem:[%s3325_s3] sm:$0xff]   ;;  %v2608_v46 = vld [vmem:[%s3325_s3 + $0x8] sm:$0xff]   ;;  %v103_v50 = vpack.c.bf16 %v45_v41, %v44_v40 }
   0xc   :  { %v72_v45 = vld [vmem:[%s3322_s0 + $0x160] sm:$0xff]  ;;  %v73_v47 = vld [vmem:[%s3322_s0 + $0x168] sm:$0xff]  ;;  %2455 = vmatprep.subr.bf16.mxu1 %v2607_v44  ;;  %v2609_v49 = vld [vmem:[%s3325_s3 + $0x10] sm:$0xff]   ;;  %v116_v51 = vpack.c.bf16 %v71_v43, %v70_v42 }
   0xd   :  { %2456 = vmatpush3.bf16.msra.mxu1 %v2607_v44  ;;  %v117_v52 = vpack.c.bf16 %v73_v47, %v72_v45 }
   0xe   :  { %2396 = vmatmul.mubr.msk.bf16.gmra.mrb[4].mxu0 %vm138_vm1, %v98_v15  ;;  %2457 = vmatprep.subr.bf16.mxu1 %v2608_v46 }
   0xf   :  { %2399 = vmatprep.mubr.msk.bf16.mxu0 %vm138_vm1, %v99_v16 }
  0x11   :  { %2428 = vmatmul.mubr.msk.bf16.gmra.mrb[4].mxu1 %vm138_vm1, %v114_v36 }
  0x12   :  { %2431 = vmatprep.mubr.msk.bf16.mxu1 %vm138_vm1, %v115_v39 }
  0x16   :  { %2400 = vmatmul.mubr.msk.bf16.gmra.mrb[8].mxu0 %vm138_vm1, %v100_v32 }
  0x17   :  { %2403 = vmatprep.mubr.msk.bf16.mxu0 %vm138_vm1, %v101_v35 }
  0x18   :  { %12 = vsyncpa [#allocation3], 0  ;;  %2458 = vmatpush3.bf16.msra.mxu1 %v2608_v46  ;;  %v46_v53 = vld [vmem:[%s3322_s0 + $0x90] sm:$0xff]  ;;  %v47_v54 = vld [vmem:[%s3322_s0 + $0x98] sm:$0xff]  ;;  %vm663_vm2 = vcmask 523264   ;;  %vm2081_vm3 = vcmask 1041409  }
  0x19   :  { %2459 = vmatprep.subr.bf16.mxu1 %v2609_v49  ;;  %v2610_v55 = vld [vmem:[%s3325_s3 + $0x18] sm:$0xff]   ;;  %v48_v56 = vld [vmem:[%s3322_s0 + $0xa0] sm:$0xff]  ;;  %v49_v57 = vld [vmem:[%s3322_s0 + $0xa8] sm:$0xff]  ;;  %2432 = vmatmul.mubr.msk.bf16.gmra.mrb[8].mxu1 %vm138_vm1, %v116_v51  ;;  %v104_v60 = vpack.c.bf16 %v47_v54, %v46_v53  ;;  %vm2083_vm4 = vcmask 1042434   ;;  %vm2085_vm5 = vcmask 1043459   ;;  %vm2087_vm6 = vcmask 1044484  }
  0x1a   :  { %2435 = vmatprep.mubr.msk.bf16.mxu1 %vm138_vm1, %v117_v52  ;;  %v74_v58 = vld [vmem:[%s3322_s0 + $0x170] sm:$0xff]  ;;  %v75_v59 = vld [vmem:[%s3322_s0 + $0x178] sm:$0xff]  ;;  %v76_v61 = vld [vmem:[%s3322_s0 + $0x180] sm:$0xff]  ;;  %v105_v63 = vpack.c.bf16 %v49_v57, %v48_v56  ;;  %vm2089_vm7 = vcmask 1045509   ;;  %vm2091_vm8 = vcmask 1046534   ;;  %vm2093_vm9 = vcmask 1047559  }
  0x1b   :  { %v77_v62 = vld [vmem:[%s3322_s0 + $0x188] sm:$0xff]  ;;  %v118_v0 = vpack.c.bf16 %v75_v59, %v74_v58  ;;  %v50_v2 = vld [vmem:[%s3322_s0 + $0xb0] sm:$0xff]  ;;  %v51_v3 = vld [vmem:[%s3322_s0 + $0xb8] sm:$0xff] }
  0x1c   :  { %2460 = vmatpush3.bf16.msra.mxu1 %v2609_v49  ;;  %v119_v1 = vpack.c.bf16 %v77_v62, %v76_v61  ;;  %v52_v4 = vld [vmem:[%s3322_s0 + $0xc0] sm:$0xff]  ;;  %v53_v5 = vld [vmem:[%s3322_s0 + $0xc8] sm:$0xff]  ;;  %v78_v6 = vld [vmem:[%s3322_s0 + $0x190] sm:$0xff]  ;;  %v106_v8 = vpack.c.bf16 %v51_v3, %v50_v2 }
  0x1d   :  { %2461 = vmatprep.subr.bf16.mxu1 %v2610_v55  ;;  %v79_v7 = vld [vmem:[%s3322_s0 + $0x198] sm:$0xff]  ;;  %v80_v9 = vld [vmem:[%s3322_s0 + $0x1a0] sm:$0xff]  ;;  %v81_v10 = vld [vmem:[%s3322_s0 + $0x1a8] sm:$0xff]  ;;  %v107_v11 = vpack.c.bf16 %v53_v5, %v52_v4 }
  0x1e   :  { %2404 = vmatmul.mubr.msk.bf16.gmra.mrb[12].mxu0 %vm138_vm1, %v102_v48  ;;  %v120_v12 = vpack.c.bf16 %v79_v7, %v78_v6  ;;  %v121_v13 = vpack.c.bf16 %v81_v10, %v80_v9  ;;  %v54_v14 = vld [vmem:[%s3322_s0 + $0xd0] sm:$0xff]  ;;  %v55_v15 = vld [vmem:[%s3322_s0 + $0xd8] sm:$0xff]  ;;  %v56_v16 = vld [vmem:[%s3322_s0 + $0xe0] sm:$0xff] }
  0x1f   :  { %2407 = vmatprep.mubr.msk.bf16.mxu0 %vm138_vm1, %v103_v50  ;;  %v57_v17 = vld [vmem:[%s3322_s0 + $0xe8] sm:$0xff]  ;;  %v82_v18 = vld [vmem:[%s3322_s0 + $0x1b0] sm:$0xff]  ;;  %v83_v19 = vld [vmem:[%s3322_s0 + $0x1b8] sm:$0xff]  ;;  %v108_v20 = vpack.c.bf16 %v55_v15, %v54_v14 }
  0x20   :  { %2462 = vmatpush3.bf16.msra.mxu1 %v2610_v55  ;;  %v84_v21 = vld [vmem:[%s3322_s0 + $0x1c0] sm:$0xff]  ;;  %v85_v22 = vld [vmem:[%s3322_s0 + $0x1c8] sm:$0xff]  ;;  %v109_v23 = vpack.c.bf16 %v57_v17, %v56_v16  ;;  %v122_v24 = vpack.c.bf16 %v83_v19, %v82_v18  ;;  %v58_v26 = vld [vmem:[%s3322_s0 + $0xf0] sm:$0xff] }
  0x21   :  { %2436 = vmatmul.mubr.msk.bf16.gmra.mrb[12].mxu1 %vm138_vm1, %v118_v0  ;;  %v123_v25 = vpack.c.bf16 %v85_v22, %v84_v21  ;;  %v59_v27 = vld [vmem:[%s3322_s0 + $0xf8] sm:$0xff]  ;;  %v86_v28 = vld [vmem:[%s3322_s0 + $0x1d0] sm:$0xff]  ;;  %v88_v31 = vld [vmem:[%s3322_s0 + $0x1e0] sm:$0xff] }
  0x22   :  { %2439 = vmatprep.mubr.msk.bf16.mxu1 %vm138_vm1, %v119_v1  ;;  %v87_v29 = vld [vmem:[%s3322_s0 + $0x1d8] sm:$0xff]  ;;  %v110_v30 = vpack.c.bf16 %v59_v27, %v58_v26  ;;  %v89_v32 = vld [vmem:[%s3322_s0 + $0x1e8] sm:$0xff]  ;;  %v90_v35 = vld [vmem:[%s3322_s0 + $0x1f0] sm:$0xff] }
  0x23   :  { %v124_v33 = vpack.c.bf16 %v87_v29, %v86_v28  ;;  %v125_v34 = vpack.c.bf16 %v89_v32, %v88_v31  ;;  %v91_v36 = vld [vmem:[%s3322_s0 + $0x1f8] sm:$0xff]  ;;  %v2925_v38 = vld [vmem:[%s3324_s2] ss:$0 sm:$0xff]  ;;  %v2612_v47 = vld [vmem:[%s3327_s5 + $0x8] sm:$0xff]  }
  0x24   :  { %v126_v37 = vpack.c.bf16 %v91_v36, %v90_v35  ;;  %v2611_v46 = vld [vmem:[%s3327_s5] sm:$0xff]   ;;  %v2613_v54 = vld [vmem:[%s3327_s5 + $0x10] sm:$0xff]   ;;  %v2614_v2 = vld [vmem:[%s3327_s5 + $0x18] sm:$0xff]  }
  0x25   :  { %2527 = vmatprep.subr.bf16.mxu0 %v2611_v46 }
  0x26   :  { %2408 = vmatmul.mubr.msk.bf16.gmra.mrb[16].mxu0 %vm138_vm1, %v104_v60 }
  0x27   :  { %2411 = vmatprep.mubr.msk.bf16.mxu0 %vm138_vm1, %v105_v63  ;;  %2528 = vmatpush3.bf16.msra.mxu0 %v2611_v46 }
  0x28   :  { %2529 = vmatprep.subr.bf16.mxu0 %v2612_v47 }
  0x29   :  { %2440 = vmatmul.mubr.msk.bf16.gmra.mrb[16].mxu1 %vm138_vm1, %v120_v12 }
  0x2a   :  { %2443 = vmatprep.mubr.msk.bf16.mxu1 %vm138_vm1, %v121_v13 }
  0x2b   :  { %2530 = vmatpush3.bf16.msra.mxu0 %v2612_v47 }
  0x2c   :  { %2531 = vmatprep.subr.bf16.mxu0 %v2613_v54 }
  0x2e   :  { %2412 = vmatmul.mubr.msk.bf16.gmra.mrb[20].mxu0 %vm138_vm1, %v106_v8 }
  0x2f   :  { %2415 = vmatprep.mubr.msk.bf16.mxu0 %vm138_vm1, %v107_v11  ;;  %2532 = vmatpush3.bf16.msra.mxu0 %v2613_v54 }
  0x30   :  { %2533 = vmatprep.subr.bf16.mxu0 %v2614_v2 }
  0x31   :  { %2444 = vmatmul.mubr.msk.bf16.gmra.mrb[20].mxu1 %vm138_vm1, %v122_v24 }
  0x32   :  { %2447 = vmatprep.mubr.msk.bf16.mxu1 %vm138_vm1, %v123_v25 }
  0x33   :  { %2534 = vmatpush3.bf16.msra.mxu0 %v2614_v2 }
  0x36   :  { %2416 = vmatmul.mubr.msk.bf16.gmra.mrb[24].mxu0 %vm138_vm1, %v108_v20 }
  0x37   :  { %2419 = vmatprep.mubr.msk.bf16.mxu0 %vm138_vm1, %v109_v23 }
  0x39   :  { %2448 = vmatmul.mubr.msk.bf16.gmra.mrb[24].mxu1 %vm138_vm1, %v124_v33 }
  0x3a   :  { %2451 = vmatprep.mubr.msk.bf16.mxu1 %vm138_vm1, %v125_v34 }
  0x3e   :  { %2420 = vmatmul.mubr.msk.bf16.gmra.mrb[28].mxu0 %vm138_vm1, %v110_v30 }
  0x41   :  { %2452 = vmatmul.mubr.msk.bf16.gmra.mrb[28].mxu1 %vm138_vm1, %v126_v37 }
  0xd9   :  { %v2393_v39 = vpop.f32.mrb[0].mxu0 }
  0xda   :  { %v282_v40 = vadd.f32 %v2393_v39, %v2925_v38  ;;  %v273_v41 = vpop.f32.mrb[1].mxu0 }
  0xdb   :  { %v274_v42 = vadd.f32 %v2925_v38, %v273_v41  ;;  %v2394_v43 = vpop.f32.mrb[2].mxu0 }
  0xdc   :  { %v285_v44 = vadd.f32 %v2394_v43, %v2925_v38  ;;  %v276_v45 = vpop.f32.mrb[3].mxu0  ;;  %v530_v49 = vmax.f32 %v282_v40, 0.0  ;;  %v2425_v61 = vpop.f32.mrb[0].mxu1 }
  0xdd   :  { %v277_v48 = vadd.f32 %v2925_v38, %v276_v45  ;;  %v528_v51 = vmax.f32 %v274_v42, 0.0  ;;  %v410_v0 = vadd.f32 %v2425_v61, %v2925_v38  ;;  %v401_v1 = vpop.f32.mrb[1].mxu1 }
  0xde   :  { %v531_v50 = vmax.f32 %v285_v44, 0.0  ;;  %v402_v4 = vadd.f32 %v2925_v38, %v401_v1  ;;  %v2426_v5 = vpop.f32.mrb[2].mxu1 }
  0xdf   :  { %v529_v52 = vmax.f32 %v277_v48, 0.0  ;;  %v562_v8 = vmax.f32 %v410_v0, 0.0  ;;  %v413_v9 = vadd.f32 %v2426_v5, %v2925_v38  ;;  %v404_v10 = vpop.f32.mrb[3].mxu1 }
  0xe0   :  { %v602_v53 = vpack.c.bf16 %v531_v50, %v530_v49  ;;  %v560_v13 = vmax.f32 %v402_v4, 0.0  ;;  %v405_v14 = vadd.f32 %v2925_v38, %v404_v10 }
  0xe1   :  { %v601_v55 = vpack.c.bf16 %v529_v52, %v528_v51  ;;  %v2397_v56 = vpop.f32.mrb[4].mxu0  ;;  %v563_v16 = vmax.f32 %v413_v9, 0.0 }
  0xe2   :  { %v298_v57 = vadd.f32 %v2397_v56, %v2925_v38  ;;  %v289_v58 = vpop.f32.mrb[5].mxu0  ;;  %v561_v19 = vmax.f32 %v405_v14, 0.0 }
  0xe3   :  { %v290_v59 = vadd.f32 %v2925_v38, %v289_v58  ;;  %v2398_v60 = vpop.f32.mrb[6].mxu0  ;;  %2463 = vmatprep.mubr.msk.bf16.mxu1 %vm663_vm2, %v601_v55  ;;  %v2954_v22 = vpack.c.bf16 %v563_v16, %v562_v8 }
  0xe4   :  { %v301_v62 = vadd.f32 %v2398_v60, %v2925_v38  ;;  %v292_v63 = vpop.f32.mrb[7].mxu0  ;;  %2464 = vmatmul.mubr.msk.bf16.vlgmr.msra.gmra.mrb[32].mxu1 %vm663_vm2, %v602_v53  ;;  %v534_v6 = vmax.f32 %v298_v57, 0.0  ;;  %v2958_v25 = vpack.c.bf16 %v561_v19, %v560_v13  ;;  %v2429_v26 = vpop.f32.mrb[4].mxu1 }
  0xe5   :  { %v293_v3 = vadd.f32 %v2925_v38, %v292_v63  ;;  %v532_v11 = vmax.f32 %v290_v59, 0.0  ;;  %v426_v29 = vadd.f32 %v2429_v26, %v2925_v38  ;;  %v417_v30 = vpop.f32.mrb[5].mxu1 }
  0xe6   :  { %v535_v7 = vmax.f32 %v301_v62, 0.0  ;;  %v418_v32 = vadd.f32 %v2925_v38, %v417_v30  ;;  %v2430_v33 = vpop.f32.mrb[6].mxu1 }
  0xe7   :  { %v533_v12 = vmax.f32 %v293_v3, 0.0  ;;  %v566_v36 = vmax.f32 %v426_v29, 0.0  ;;  %v429_v37 = vadd.f32 %v2430_v33, %v2925_v38  ;;  %v420_v39 = vpop.f32.mrb[7].mxu1 }
  0xe8   :  { %v604_v15 = vpack.c.bf16 %v535_v7, %v534_v6  ;;  %v564_v42 = vmax.f32 %v418_v32, 0.0  ;;  %v421_v43 = vadd.f32 %v2925_v38, %v420_v39 }
  0xe9   :  { %v603_v17 = vpack.c.bf16 %v533_v12, %v532_v11  ;;  %v2401_v18 = vpop.f32.mrb[8].mxu0  ;;  %v567_v45 = vmax.f32 %v429_v37, 0.0 }
  0xea   :  { %v314_v20 = vadd.f32 %v2401_v18, %v2925_v38  ;;  %v305_v21 = vpop.f32.mrb[9].mxu0  ;;  %v565_v48 = vmax.f32 %v421_v43, 0.0 }
  0xeb   :  { %v306_v23 = vadd.f32 %v2925_v38, %v305_v21  ;;  %v2402_v24 = vpop.f32.mrb[10].mxu0  ;;  %2467 = vmatprep.mubr.msk.bf16.mxu1 %vm663_vm2, %v603_v17  ;;  %v2968_v51 = vpack.c.bf16 %v567_v45, %v566_v36 }
  0xec   :  { %v317_v27 = vadd.f32 %v2402_v24, %v2925_v38  ;;  %v308_v28 = vpop.f32.mrb[11].mxu0  ;;  %2468 = vmatmul.mubr.msk.bf16.gmra.mrb[36].mxu1 %vm663_vm2, %v604_v15  ;;  %v538_v34 = vmax.f32 %v314_v20, 0.0  ;;  %v2972_v54 = vpack.c.bf16 %v565_v48, %v564_v42  ;;  %v2433_v55 = vpop.f32.mrb[8].mxu1 }
  0xed   :  { %v309_v31 = vadd.f32 %v2925_v38, %v308_v28  ;;  %v536_v40 = vmax.f32 %v306_v23, 0.0  ;;  %v442_v58 = vadd.f32 %v2433_v55, %v2925_v38  ;;  %v433_v59 = vpop.f32.mrb[9].mxu1 }
  0xee   :  { %v539_v35 = vmax.f32 %v317_v27, 0.0  ;;  %v434_v61 = vadd.f32 %v2925_v38, %v433_v59  ;;  %v2434_v62 = vpop.f32.mrb[10].mxu1 }
  0xef   :  { %v537_v41 = vmax.f32 %v309_v31, 0.0  ;;  %v570_v1 = vmax.f32 %v442_v58, 0.0  ;;  %v445_v2 = vadd.f32 %v2434_v62, %v2925_v38  ;;  %v436_v3 = vpop.f32.mrb[11].mxu1 }
  0xf0   :  { %v606_v44 = vpack.c.bf16 %v539_v35, %v538_v34  ;;  %v568_v6 = vmax.f32 %v434_v61, 0.0  ;;  %v437_v7 = vadd.f32 %v2925_v38, %v436_v3 }
  0xf1   :  { %v605_v46 = vpack.c.bf16 %v537_v41, %v536_v40  ;;  %v2405_v47 = vpop.f32.mrb[12].mxu0  ;;  %v571_v9 = vmax.f32 %v445_v2, 0.0 }
  0xf2   :  { %v330_v49 = vadd.f32 %v2405_v47, %v2925_v38  ;;  %v321_v50 = vpop.f32.mrb[13].mxu0  ;;  %v569_v12 = vmax.f32 %v437_v7, 0.0 }
  0xf3   :  { %v322_v52 = vadd.f32 %v2925_v38, %v321_v50  ;;  %v2406_v53 = vpop.f32.mrb[14].mxu0  ;;  %2471 = vmatprep.mubr.msk.bf16.mxu1 %vm663_vm2, %v605_v46  ;;  %v2982_v15 = vpack.c.bf16 %v571_v9, %v570_v1 }
  0xf4   :  { %v333_v56 = vadd.f32 %v2406_v53, %v2925_v38  ;;  %v324_v57 = vpop.f32.mrb[15].mxu0  ;;  %2472 = vmatmul.mubr.msk.bf16.gmra.mrb[40].mxu1 %vm663_vm2, %v606_v44  ;;  %v542_v63 = vmax.f32 %v330_v49, 0.0  ;;  %v2986_v18 = vpack.c.bf16 %v569_v12, %v568_v6  ;;  %v2437_v19 = vpop.f32.mrb[12].mxu1 }
  0xf5   :  { %v325_v60 = vadd.f32 %v2925_v38, %v324_v57  ;;  %v540_v4 = vmax.f32 %v322_v52, 0.0  ;;  %v458_v23 = vadd.f32 %v2437_v19, %v2925_v38  ;;  %v449_v24 = vpop.f32.mrb[13].mxu1 }
  0xf6   :  { %v543_v0 = vmax.f32 %v333_v56, 0.0  ;;  %v450_v27 = vadd.f32 %v2925_v38, %v449_v24  ;;  %v2438_v28 = vpop.f32.mrb[14].mxu1 }
  0xf7   :  { %v541_v5 = vmax.f32 %v325_v60, 0.0  ;;  %v574_v31 = vmax.f32 %v458_v23, 0.0  ;;  %v461_v32 = vadd.f32 %v2438_v28, %v2925_v38  ;;  %v452_v33 = vpop.f32.mrb[15].mxu1 }
  0xf8   :  { %v608_v8 = vpack.c.bf16 %v543_v0, %v542_v63  ;;  %v572_v36 = vmax.f32 %v450_v27, 0.0  ;;  %v453_v37 = vadd.f32 %v2925_v38, %v452_v33 }
  0xf9   :  { %v607_v10 = vpack.c.bf16 %v541_v5, %v540_v4  ;;  %v2409_v11 = vpop.f32.mrb[16].mxu0  ;;  %v575_v40 = vmax.f32 %v461_v32, 0.0 }
  0xfa   :  { %v346_v13 = vadd.f32 %v2409_v11, %v2925_v38  ;;  %v337_v14 = vpop.f32.mrb[17].mxu0  ;;  %v573_v43 = vmax.f32 %v453_v37, 0.0 }
  0xfb   :  { %v338_v16 = vadd.f32 %v2925_v38, %v337_v14  ;;  %v2410_v17 = vpop.f32.mrb[18].mxu0  ;;  %2475 = vmatprep.mubr.msk.bf16.mxu1 %vm663_vm2, %v607_v10  ;;  %v2996_v46 = vpack.c.bf16 %v575_v40, %v574_v31 }
  0xfc   :  { %v349_v20 = vadd.f32 %v2410_v17, %v2925_v38  ;;  %v340_v21 = vpop.f32.mrb[19].mxu0  ;;  %2476 = vmatmul.mubr.msk.bf16.gmra.mrb[44].mxu1 %vm663_vm2, %v608_v8  ;;  %v546_v29 = vmax.f32 %v346_v13, 0.0  ;;  %v3000_v49 = vpack.c.bf16 %v573_v43, %v572_v36  ;;  %v2441_v50 = vpop.f32.mrb[16].mxu1 }
  0xfd   :  { %v341_v26 = vadd.f32 %v2925_v38, %v340_v21  ;;  %v544_v34 = vmax.f32 %v338_v16, 0.0  ;;  %v474_v55 = vadd.f32 %v2441_v50, %v2925_v38  ;;  %v465_v56 = vpop.f32.mrb[17].mxu1 }
  0xfe   :  { %v547_v30 = vmax.f32 %v349_v20, 0.0  ;;  %v466_v58 = vadd.f32 %v2925_v38, %v465_v56  ;;  %v2442_v59 = vpop.f32.mrb[18].mxu1 }
  0xff   :  { %v545_v35 = vmax.f32 %v341_v26, 0.0  ;;  %v578_v62 = vmax.f32 %v474_v55, 0.0  ;;  %v477_v63 = vadd.f32 %v2442_v59, %v2925_v38  ;;  %v468_v0 = vpop.f32.mrb[19].mxu1 }
 0x100   :  { %v610_v39 = vpack.c.bf16 %v547_v30, %v546_v29  ;;  %v576_v3 = vmax.f32 %v466_v58, 0.0  ;;  %v469_v4 = vadd.f32 %v2925_v38, %v468_v0 }
 0x101   :  { %v609_v41 = vpack.c.bf16 %v545_v35, %v544_v34  ;;  %v2413_v42 = vpop.f32.mrb[20].mxu0  ;;  %v579_v6 = vmax.f32 %v477_v63, 0.0 }
 0x102   :  { %v362_v44 = vadd.f32 %v2413_v42, %v2925_v38  ;;  %v353_v45 = vpop.f32.mrb[21].mxu0  ;;  %v577_v9 = vmax.f32 %v469_v4, 0.0 }
 0x103   :  { %v354_v47 = vadd.f32 %v2925_v38, %v353_v45  ;;  %v2414_v48 = vpop.f32.mrb[22].mxu0  ;;  %2479 = vmatprep.mubr.msk.bf16.mxu1 %vm663_vm2, %v609_v41  ;;  %v3010_v12 = vpack.c.bf16 %v579_v6, %v578_v62 }
 0x104   :  { %v365_v52 = vadd.f32 %v2414_v48, %v2925_v38  ;;  %v356_v53 = vpop.f32.mrb[23].mxu0  ;;  %2480 = vmatmul.mubr.msk.bf16.gmra.mrb[48].mxu1 %vm663_vm2, %v610_v39  ;;  %v550_v60 = vmax.f32 %v362_v44, 0.0  ;;  %v3014_v16 = vpack.c.bf16 %v577_v9, %v576_v3  ;;  %v2445_v17 = vpop.f32.mrb[20].mxu1 }
 0x105   :  { %v357_v57 = vadd.f32 %v2925_v38, %v356_v53  ;;  %v548_v1 = vmax.f32 %v354_v47, 0.0  ;;  %v490_v21 = vadd.f32 %v2445_v17, %v2925_v38  ;;  %v481_v23 = vpop.f32.mrb[21].mxu1 }
 0x106   :  { %v551_v61 = vmax.f32 %v365_v52, 0.0  ;;  %v482_v26 = vadd.f32 %v2925_v38, %v481_v23  ;;  %v2446_v27 = vpop.f32.mrb[22].mxu1 }
 0x107   :  { %v549_v2 = vmax.f32 %v357_v57, 0.0  ;;  %v582_v30 = vmax.f32 %v490_v21, 0.0  ;;  %v493_v31 = vadd.f32 %v2446_v27, %v2925_v38  ;;  %v484_v32 = vpop.f32.mrb[23].mxu1 }
 0x108   :  { %v612_v5 = vpack.c.bf16 %v551_v61, %v550_v60  ;;  %v580_v35 = vmax.f32 %v482_v26, 0.0  ;;  %v485_v36 = vadd.f32 %v2925_v38, %v484_v32 }
 0x109   :  { %v611_v7 = vpack.c.bf16 %v549_v2, %v548_v1  ;;  %v2417_v8 = vpop.f32.mrb[24].mxu0  ;;  %v583_v39 = vmax.f32 %v493_v31, 0.0 }
 0x10a   :  { %v378_v10 = vadd.f32 %v2417_v8, %v2925_v38  ;;  %v369_v11 = vpop.f32.mrb[25].mxu0  ;;  %v581_v42 = vmax.f32 %v485_v36, 0.0 }
 0x10b   :  { %v370_v13 = vadd.f32 %v2925_v38, %v369_v11  ;;  %v2418_v14 = vpop.f32.mrb[26].mxu0  ;;  %2483 = vmatprep.mubr.msk.bf16.mxu1 %vm663_vm2, %v611_v7  ;;  %v628_v45 = vpack.c.bf16 %v583_v39, %v582_v30 }
 0x10c   :  { %v381_v19 = vadd.f32 %v2418_v14, %v2925_v38  ;;  %v372_v20 = vpop.f32.mrb[27].mxu0  ;;  %2484 = vmatmul.mubr.msk.bf16.gmra.mrb[52].mxu1 %vm663_vm2, %v612_v5  ;;  %v554_v28 = vmax.f32 %v378_v10, 0.0  ;;  %v627_v50 = vpack.c.bf16 %v581_v42, %v580_v35  ;;  %v2449_v52 = vpop.f32.mrb[24].mxu1 }
 0x10d   :  { %v373_v24 = vadd.f32 %v2925_v38, %v372_v20  ;;  %v552_v33 = vmax.f32 %v370_v13, 0.0  ;;  %v506_v56 = vadd.f32 %v2449_v52, %v2925_v38  ;;  %v497_v57 = vpop.f32.mrb[25].mxu1 }
 0x10e   :  { %v555_v29 = vmax.f32 %v381_v19, 0.0  ;;  %v498_v59 = vadd.f32 %v2925_v38, %v497_v57  ;;  %v2450_v60 = vpop.f32.mrb[26].mxu1 }
 0x10f   :  { %v553_v34 = vmax.f32 %v373_v24, 0.0  ;;  %v586_v63 = vmax.f32 %v506_v56, 0.0  ;;  %v509_v0 = vadd.f32 %v2450_v60, %v2925_v38  ;;  %v500_v1 = vpop.f32.mrb[27].mxu1 }
 0x110   :  { %v614_v37 = vpack.c.bf16 %v555_v29, %v554_v28  ;;  %v584_v4 = vmax.f32 %v498_v59, 0.0  ;;  %v501_v5 = vadd.f32 %v2925_v38, %v500_v1 }
 0x111   :  { %v613_v40 = vpack.c.bf16 %v553_v34, %v552_v33  ;;  %v2421_v41 = vpop.f32.mrb[28].mxu0  ;;  %v587_v7 = vmax.f32 %v509_v0, 0.0 }
 0x112   :  { %v394_v43 = vadd.f32 %v2421_v41, %v2925_v38  ;;  %v385_v44 = vpop.f32.mrb[29].mxu0  ;;  %v585_v9 = vmax.f32 %v501_v5, 0.0 }
 0x113   :  { %v386_v47 = vadd.f32 %v2925_v38, %v385_v44  ;;  %v2422_v48 = vpop.f32.mrb[30].mxu0  ;;  %2487 = vmatprep.mubr.msk.bf16.mxu1 %vm663_vm2, %v613_v40  ;;  %v630_v10 = vpack.c.bf16 %v587_v7, %v586_v63 }
 0x114   :  { %v397_v53 = vadd.f32 %v2422_v48, %v2925_v38  ;;  %v388_v55 = vpop.f32.mrb[31].mxu0  ;;  %2488 = vmatmul.mubr.msk.bf16.gmra.mrb[56].mxu1 %vm663_vm2, %v614_v37  ;;  %v558_v61 = vmax.f32 %v394_v43, 0.0  ;;  %v629_v11 = vpack.c.bf16 %v585_v9, %v584_v4  ;;  %v2453_v13 = vpop.f32.mrb[28].mxu1 }
 0x115   :  { %v389_v58 = vadd.f32 %v2925_v38, %v388_v55  ;;  %v556_v2 = vmax.f32 %v386_v47, 0.0  ;;  %v522_v14 = vadd.f32 %v2453_v13, %v2925_v38  ;;  %v513_v17 = vpop.f32.mrb[29].mxu1 }
 0x116   :  { %v559_v62 = vmax.f32 %v397_v53, 0.0  ;;  %v514_v19 = vadd.f32 %v2925_v38, %v513_v17  ;;  %v2454_v20 = vpop.f32.mrb[30].mxu1 }
 0x117   :  { %v557_v3 = vmax.f32 %v389_v58, 0.0  ;;  %v590_v21 = vmax.f32 %v522_v14, 0.0  ;;  %v525_v23 = vadd.f32 %v2454_v20, %v2925_v38  ;;  %v516_v24 = vpop.f32.mrb[31].mxu1 }
 0x118   :  { %v616_v6 = vpack.c.bf16 %v559_v62, %v558_v61  ;;  %v588_v26 = vmax.f32 %v514_v19, 0.0  ;;  %v517_v27 = vadd.f32 %v2925_v38, %v516_v24  ;;  %v3068_v38 = vld [vmem:[%s3326_s4] ss:$0 sm:$0xff] }
 0x119   :  { %v615_v8 = vpack.c.bf16 %v557_v3, %v556_v2  ;;  %v591_v28 = vmax.f32 %v525_v23, 0.0 }
 0x11a   :  { %v589_v29 = vmax.f32 %v517_v27, 0.0 }
 0x11b   :  { %2491 = vmatprep.mubr.msk.bf16.mxu1 %vm663_vm2, %v615_v8  ;;  %v632_v30 = vpack.c.bf16 %v591_v28, %v590_v21 }
 0x11c   :  { %2492 = vmatmul.mubr.msk.bf16.gmra.mrb[60].mxu1 %vm663_vm2, %v616_v6  ;;  %v631_v31 = vpack.c.bf16 %v589_v29, %v588_v26 }
 0x11d   :  { %2495 = vmatprep.mubr.msk.bf16.mxu1 %vm663_vm2, %v2958_v25 }
 0x124   :  { %2496 = vmatmul.mubr.msk.bf16.gmra.mrb[64].mxu1 %vm663_vm2, %v2954_v22 }
 0x125   :  { %2499 = vmatprep.mubr.msk.bf16.mxu1 %vm663_vm2, %v2972_v54 }
 0x12c   :  { %2500 = vmatmul.mubr.msk.bf16.gmra.mrb[68].mxu1 %vm663_vm2, %v2968_v51 }
 0x12d   :  { %2503 = vmatprep.mubr.msk.bf16.mxu1 %vm663_vm2, %v2986_v18 }
 0x134   :  { %2504 = vmatmul.mubr.msk.bf16.gmra.mrb[72].mxu1 %vm663_vm2, %v2982_v15 }
 0x135   :  { %2507 = vmatprep.mubr.msk.bf16.mxu1 %vm663_vm2, %v3000_v49 }
 0x13c   :  { %2508 = vmatmul.mubr.msk.bf16.gmra.mrb[76].mxu1 %vm663_vm2, %v2996_v46 }
 0x13d   :  { %2511 = vmatprep.mubr.msk.bf16.mxu1 %vm663_vm2, %v3014_v16 }
 0x144   :  { %2512 = vmatmul.mubr.msk.bf16.gmra.mrb[80].mxu1 %vm663_vm2, %v3010_v12 }
 0x145   :  { %2515 = vmatprep.mubr.msk.bf16.mxu1 %vm663_vm2, %v627_v50 }
 0x14c   :  { %2516 = vmatmul.mubr.msk.bf16.gmra.mrb[84].mxu1 %vm663_vm2, %v628_v45 }
 0x14d   :  { %2519 = vmatprep.mubr.msk.bf16.mxu1 %vm663_vm2, %v629_v11 }
 0x154   :  { %2520 = vmatmul.mubr.msk.bf16.gmra.mrb[88].mxu1 %vm663_vm2, %v630_v10 }
 0x155   :  { %2523 = vmatprep.mubr.msk.bf16.mxu1 %vm663_vm2, %v631_v31 }
 0x15c   :  { %2524 = vmatmul.mubr.msk.bf16.gmra.mrb[92].mxu1 %vm663_vm2, %v632_v30 }
 0x1b7   :  { %v2465_v22 = vpop.f32.mrb[32].mxu1 }
 0x1b8   :  { %v803_v25 = vadd.f32 %v2465_v22, %v3068_v38  ;;  %v794_v51 = vpop.f32.mrb[33].mxu1 }
 0x1b9   :  { %v795_v54 = vadd.f32 %v3068_v38, %v794_v51  ;;  %v2466_v15 = vpop.f32.mrb[34].mxu1 }
 0x1ba   :  { %v806_v18 = vadd.f32 %v2466_v15, %v3068_v38  ;;  %v797_v46 = vpop.f32.mrb[35].mxu1  ;;  %v1051_v12 = vmax.f32 %v803_v25, 0.0 }
 0x1bb   :  { %v798_v49 = vadd.f32 %v3068_v38, %v797_v46  ;;  %v1049_v32 = vmax.f32 %v795_v54, 0.0 }
 0x1bc   :  { %v1052_v16 = vmax.f32 %v806_v18, 0.0 }
 0x1bd   :  { %v1050_v33 = vmax.f32 %v798_v49, 0.0 }
 0x1be   :  { %v1123_v34 = vpack.c.bf16 %v1052_v16, %v1051_v12 }
 0x1bf   :  { %v1122_v35 = vpack.c.bf16 %v1050_v33, %v1049_v32  ;;  %v2469_v36 = vpop.f32.mrb[36].mxu1 }
 0x1c0   :  { %v819_v37 = vadd.f32 %v2469_v36, %v3068_v38  ;;  %v810_v39 = vpop.f32.mrb[37].mxu1 }
 0x1c1   :  { %v811_v40 = vadd.f32 %v3068_v38, %v810_v39  ;;  %v2470_v41 = vpop.f32.mrb[38].mxu1  ;;  %2535 = vmatprep.mubr.msk.bf16.mxu0 %vm663_vm2, %v1122_v35 }
 0x1c2   :  { %v822_v42 = vadd.f32 %v2470_v41, %v3068_v38  ;;  %v813_v43 = vpop.f32.mrb[39].mxu1  ;;  %2536 = vmatmul.mubr.msk.bf16.vlgmr.msra.gmra.mrb[32].mxu0 %vm663_vm2, %v1123_v34  ;;  %v1055_v45 = vmax.f32 %v819_v37, 0.0 }
 0x1c3   :  { %v814_v44 = vadd.f32 %v3068_v38, %v813_v43  ;;  %v1053_v48 = vmax.f32 %v811_v40, 0.0 }
 0x1c4   :  { %v1056_v47 = vmax.f32 %v822_v42, 0.0 }
 0x1c5   :  { %v1054_v50 = vmax.f32 %v814_v44, 0.0 }
 0x1c6   :  { %v1125_v52 = vpack.c.bf16 %v1056_v47, %v1055_v45 }
 0x1c7   :  { %v1124_v53 = vpack.c.bf16 %v1054_v50, %v1053_v48  ;;  %v2473_v55 = vpop.f32.mrb[40].mxu1 }
 0x1c8   :  { %v835_v56 = vadd.f32 %v2473_v55, %v3068_v38  ;;  %v826_v57 = vpop.f32.mrb[41].mxu1 }
 0x1c9   :  { %v827_v58 = vadd.f32 %v3068_v38, %v826_v57  ;;  %v2474_v59 = vpop.f32.mrb[42].mxu1  ;;  %2539 = vmatprep.mubr.msk.bf16.mxu0 %vm663_vm2, %v1124_v53 }
 0x1ca   :  { %v838_v60 = vadd.f32 %v2474_v59, %v3068_v38  ;;  %v829_v61 = vpop.f32.mrb[43].mxu1  ;;  %2540 = vmatmul.mubr.msk.bf16.gmra.mrb[36].mxu0 %vm663_vm2, %v1125_v52  ;;  %v1059_v63 = vmax.f32 %v835_v56, 0.0 }
 0x1cb   :  { %v830_v62 = vadd.f32 %v3068_v38, %v829_v61  ;;  %v1057_v1 = vmax.f32 %v827_v58, 0.0 }
 0x1cc   :  { %v1060_v0 = vmax.f32 %v838_v60, 0.0 }
 0x1cd   :  { %v1058_v2 = vmax.f32 %v830_v62, 0.0 }
 0x1ce   :  { %v1127_v3 = vpack.c.bf16 %v1060_v0, %v1059_v63 }
 0x1cf   :  { %v1126_v4 = vpack.c.bf16 %v1058_v2, %v1057_v1  ;;  %v2477_v5 = vpop.f32.mrb[44].mxu1 }
 0x1d0   :  { %v851_v6 = vadd.f32 %v2477_v5, %v3068_v38  ;;  %v842_v7 = vpop.f32.mrb[45].mxu1 }
 0x1d1   :  { %v843_v8 = vadd.f32 %v3068_v38, %v842_v7  ;;  %v2478_v9 = vpop.f32.mrb[46].mxu1  ;;  %2543 = vmatprep.mubr.msk.bf16.mxu0 %vm663_vm2, %v1126_v4 }
 0x1d2   :  { %v854_v10 = vadd.f32 %v2478_v9, %v3068_v38  ;;  %v845_v11 = vpop.f32.mrb[47].mxu1  ;;  %2544 = vmatmul.mubr.msk.bf16.gmra.mrb[40].mxu0 %vm663_vm2, %v1127_v3  ;;  %v1063_v14 = vmax.f32 %v851_v6, 0.0 }
 0x1d3   :  { %v846_v13 = vadd.f32 %v3068_v38, %v845_v11  ;;  %v1061_v19 = vmax.f32 %v843_v8, 0.0 }
 0x1d4   :  { %v1064_v17 = vmax.f32 %v854_v10, 0.0 }
 0x1d5   :  { %v1062_v20 = vmax.f32 %v846_v13, 0.0 }
 0x1d6   :  { %v1129_v21 = vpack.c.bf16 %v1064_v17, %v1063_v14 }
 0x1d7   :  { %v1128_v23 = vpack.c.bf16 %v1062_v20, %v1061_v19  ;;  %v2481_v24 = vpop.f32.mrb[48].mxu1 }
 0x1d8   :  { %v867_v26 = vadd.f32 %v2481_v24, %v3068_v38  ;;  %v858_v27 = vpop.f32.mrb[49].mxu1 }
 0x1d9   :  { %v859_v28 = vadd.f32 %v3068_v38, %v858_v27  ;;  %v2482_v29 = vpop.f32.mrb[50].mxu1  ;;  %2547 = vmatprep.mubr.msk.bf16.mxu0 %vm663_vm2, %v1128_v23 }
 0x1da   :  { %v870_v30 = vadd.f32 %v2482_v29, %v3068_v38  ;;  %v861_v31 = vpop.f32.mrb[51].mxu1  ;;  %2548 = vmatmul.mubr.msk.bf16.gmra.mrb[44].mxu0 %vm663_vm2, %v1129_v21  ;;  %v1067_v25 = vmax.f32 %v867_v26, 0.0 }
 0x1db   :  { %v862_v22 = vadd.f32 %v3068_v38, %v861_v31  ;;  %v1065_v54 = vmax.f32 %v859_v28, 0.0 }
 0x1dc   :  { %v1068_v51 = vmax.f32 %v870_v30, 0.0 }
 0x1dd   :  { %v1066_v15 = vmax.f32 %v862_v22, 0.0 }
 0x1de   :  { %v1131_v18 = vpack.c.bf16 %v1068_v51, %v1067_v25 }
 0x1df   :  { %v1130_v46 = vpack.c.bf16 %v1066_v15, %v1065_v54  ;;  %v2485_v49 = vpop.f32.mrb[52].mxu1 }
 0x1e0   :  { %v883_v12 = vadd.f32 %v2485_v49, %v3068_v38  ;;  %v874_v16 = vpop.f32.mrb[53].mxu1 }
 0x1e1   :  { %v875_v32 = vadd.f32 %v3068_v38, %v874_v16  ;;  %v2486_v33 = vpop.f32.mrb[54].mxu1  ;;  %2551 = vmatprep.mubr.msk.bf16.mxu0 %vm663_vm2, %v1130_v46 }
 0x1e2   :  { %v886_v34 = vadd.f32 %v2486_v33, %v3068_v38  ;;  %v877_v35 = vpop.f32.mrb[55].mxu1  ;;  %2552 = vmatmul.mubr.msk.bf16.gmra.mrb[48].mxu0 %vm663_vm2, %v1131_v18  ;;  %v1071_v37 = vmax.f32 %v883_v12, 0.0 }
 0x1e3   :  { %v878_v36 = vadd.f32 %v3068_v38, %v877_v35  ;;  %v1069_v40 = vmax.f32 %v875_v32, 0.0 }
 0x1e4   :  { %v1072_v39 = vmax.f32 %v886_v34, 0.0 }
 0x1e5   :  { %v1070_v41 = vmax.f32 %v878_v36, 0.0 }
 0x1e6   :  { %v1133_v42 = vpack.c.bf16 %v1072_v39, %v1071_v37 }
 0x1e7   :  { %v1132_v43 = vpack.c.bf16 %v1070_v41, %v1069_v40  ;;  %v2489_v44 = vpop.f32.mrb[56].mxu1 }
 0x1e8   :  { %v899_v45 = vadd.f32 %v2489_v44, %v3068_v38  ;;  %v890_v47 = vpop.f32.mrb[57].mxu1 }
 0x1e9   :  { %v891_v48 = vadd.f32 %v3068_v38, %v890_v47  ;;  %v2490_v50 = vpop.f32.mrb[58].mxu1  ;;  %2555 = vmatprep.mubr.msk.bf16.mxu0 %vm663_vm2, %v1132_v43 }
 0x1ea   :  { %v902_v52 = vadd.f32 %v2490_v50, %v3068_v38  ;;  %v893_v53 = vpop.f32.mrb[59].mxu1  ;;  %2556 = vmatmul.mubr.msk.bf16.gmra.mrb[52].mxu0 %vm663_vm2, %v1133_v42  ;;  %v1075_v56 = vmax.f32 %v899_v45, 0.0 }
 0x1eb   :  { %v894_v55 = vadd.f32 %v3068_v38, %v893_v53  ;;  %v1073_v58 = vmax.f32 %v891_v48, 0.0 }
 0x1ec   :  { %v1076_v57 = vmax.f32 %v902_v52, 0.0 }
 0x1ed   :  { %v1074_v59 = vmax.f32 %v894_v55, 0.0 }
 0x1ee   :  { %v1135_v60 = vpack.c.bf16 %v1076_v57, %v1075_v56 }
 0x1ef   :  { %v1134_v61 = vpack.c.bf16 %v1074_v59, %v1073_v58  ;;  %v2493_v62 = vpop.f32.mrb[60].mxu1 }
 0x1f0   :  { %v915_v63 = vadd.f32 %v2493_v62, %v3068_v38  ;;  %v906_v0 = vpop.f32.mrb[61].mxu1 }
 0x1f1   :  { %v907_v1 = vadd.f32 %v3068_v38, %v906_v0  ;;  %v2494_v2 = vpop.f32.mrb[62].mxu1  ;;  %2559 = vmatprep.mubr.msk.bf16.mxu0 %vm663_vm2, %v1134_v61 }
 0x1f2   :  { %v918_v3 = vadd.f32 %v2494_v2, %v3068_v38  ;;  %v909_v4 = vpop.f32.mrb[63].mxu1  ;;  %2560 = vmatmul.mubr.msk.bf16.gmra.mrb[56].mxu0 %vm663_vm2, %v1135_v60  ;;  %v1079_v6 = vmax.f32 %v915_v63, 0.0 }
 0x1f3   :  { %v910_v5 = vadd.f32 %v3068_v38, %v909_v4  ;;  %v1077_v8 = vmax.f32 %v907_v1, 0.0 }
 0x1f4   :  { %v1080_v7 = vmax.f32 %v918_v3, 0.0 }
 0x1f5   :  { %v1078_v9 = vmax.f32 %v910_v5, 0.0 }
 0x1f6   :  { %v1137_v10 = vpack.c.bf16 %v1080_v7, %v1079_v6 }
 0x1f7   :  { %v1136_v11 = vpack.c.bf16 %v1078_v9, %v1077_v8  ;;  %v2497_v13 = vpop.f32.mrb[64].mxu1 }
 0x1f8   :  { %v931_v14 = vadd.f32 %v2497_v13, %v3068_v38  ;;  %v922_v17 = vpop.f32.mrb[65].mxu1 }
 0x1f9   :  { %v923_v19 = vadd.f32 %v3068_v38, %v922_v17  ;;  %v2498_v20 = vpop.f32.mrb[66].mxu1  ;;  %2563 = vmatprep.mubr.msk.bf16.mxu0 %vm663_vm2, %v1136_v11 }
 0x1fa   :  { %v934_v21 = vadd.f32 %v2498_v20, %v3068_v38  ;;  %v925_v23 = vpop.f32.mrb[67].mxu1  ;;  %2564 = vmatmul.mubr.msk.bf16.gmra.mrb[60].mxu0 %vm663_vm2, %v1137_v10  ;;  %v1083_v26 = vmax.f32 %v931_v14, 0.0 }
 0x1fb   :  { %v926_v24 = vadd.f32 %v3068_v38, %v925_v23  ;;  %v1081_v28 = vmax.f32 %v923_v19, 0.0 }
 0x1fc   :  { %v1084_v27 = vmax.f32 %v934_v21, 0.0 }
 0x1fd   :  { %v1082_v29 = vmax.f32 %v926_v24, 0.0 }
 0x1fe   :  { %v1139_v30 = vpack.c.bf16 %v1084_v27, %v1083_v26 }
 0x1ff   :  { %v1138_v31 = vpack.c.bf16 %v1082_v29, %v1081_v28  ;;  %v2501_v22 = vpop.f32.mrb[68].mxu1 }
 0x200   :  { %v947_v25 = vadd.f32 %v2501_v22, %v3068_v38  ;;  %v938_v51 = vpop.f32.mrb[69].mxu1 }
 0x201   :  { %v939_v54 = vadd.f32 %v3068_v38, %v938_v51  ;;  %v2502_v15 = vpop.f32.mrb[70].mxu1  ;;  %2567 = vmatprep.mubr.msk.bf16.mxu0 %vm663_vm2, %v1138_v31 }
 0x202   :  { %v950_v18 = vadd.f32 %v2502_v15, %v3068_v38  ;;  %v941_v46 = vpop.f32.mrb[71].mxu1  ;;  %2568 = vmatmul.mubr.msk.bf16.gmra.mrb[64].mxu0 %vm663_vm2, %v1139_v30  ;;  %v1087_v12 = vmax.f32 %v947_v25, 0.0 }
 0x203   :  { %v942_v49 = vadd.f32 %v3068_v38, %v941_v46  ;;  %v1085_v32 = vmax.f32 %v939_v54, 0.0 }
 0x204   :  { %v1088_v16 = vmax.f32 %v950_v18, 0.0 }
 0x205   :  { %v1086_v33 = vmax.f32 %v942_v49, 0.0 }
 0x206   :  { %v1141_v34 = vpack.c.bf16 %v1088_v16, %v1087_v12 }
 0x207   :  { %v1140_v35 = vpack.c.bf16 %v1086_v33, %v1085_v32  ;;  %v2505_v36 = vpop.f32.mrb[72].mxu1 }
 0x208   :  { %v963_v37 = vadd.f32 %v2505_v36, %v3068_v38  ;;  %v954_v39 = vpop.f32.mrb[73].mxu1 }
 0x209   :  { %v955_v40 = vadd.f32 %v3068_v38, %v954_v39  ;;  %v2506_v41 = vpop.f32.mrb[74].mxu1  ;;  %2571 = vmatprep.mubr.msk.bf16.mxu0 %vm663_vm2, %v1140_v35 }
 0x20a   :  { %v966_v42 = vadd.f32 %v2506_v41, %v3068_v38  ;;  %v957_v43 = vpop.f32.mrb[75].mxu1  ;;  %2572 = vmatmul.mubr.msk.bf16.gmra.mrb[68].mxu0 %vm663_vm2, %v1141_v34  ;;  %v1091_v45 = vmax.f32 %v963_v37, 0.0 }
 0x20b   :  { %v958_v44 = vadd.f32 %v3068_v38, %v957_v43  ;;  %v1089_v48 = vmax.f32 %v955_v40, 0.0 }
 0x20c   :  { %v1092_v47 = vmax.f32 %v966_v42, 0.0 }
 0x20d   :  { %v1090_v50 = vmax.f32 %v958_v44, 0.0 }
 0x20e   :  { %v1143_v52 = vpack.c.bf16 %v1092_v47, %v1091_v45 }
 0x20f   :  { %v1142_v53 = vpack.c.bf16 %v1090_v50, %v1089_v48  ;;  %v2509_v55 = vpop.f32.mrb[76].mxu1 }
 0x210   :  { %v979_v56 = vadd.f32 %v2509_v55, %v3068_v38  ;;  %v970_v57 = vpop.f32.mrb[77].mxu1 }
 0x211   :  { %v971_v58 = vadd.f32 %v3068_v38, %v970_v57  ;;  %v2510_v59 = vpop.f32.mrb[78].mxu1  ;;  %2575 = vmatprep.mubr.msk.bf16.mxu0 %vm663_vm2, %v1142_v53 }
 0x212   :  { %v982_v60 = vadd.f32 %v2510_v59, %v3068_v38  ;;  %v973_v61 = vpop.f32.mrb[79].mxu1  ;;  %2576 = vmatmul.mubr.msk.bf16.gmra.mrb[72].mxu0 %vm663_vm2, %v1143_v52  ;;  %v1095_v63 = vmax.f32 %v979_v56, 0.0 }
 0x213   :  { %v974_v62 = vadd.f32 %v3068_v38, %v973_v61  ;;  %v1093_v1 = vmax.f32 %v971_v58, 0.0 }
 0x214   :  { %v1096_v0 = vmax.f32 %v982_v60, 0.0 }
 0x215   :  { %v1094_v2 = vmax.f32 %v974_v62, 0.0  ;;  %v3169_v62 = vld [vmem:[%s3328_s6] ss:$0 sm:$0xff] }
 0x216   :  { %v1145_v3 = vpack.c.bf16 %v1096_v0, %v1095_v63 }
 0x217   :  { %v1144_v4 = vpack.c.bf16 %v1094_v2, %v1093_v1  ;;  %v2513_v5 = vpop.f32.mrb[80].mxu1 }
 0x218   :  { %v995_v6 = vadd.f32 %v2513_v5, %v3068_v38  ;;  %v986_v7 = vpop.f32.mrb[81].mxu1 }
 0x219   :  { %v987_v8 = vadd.f32 %v3068_v38, %v986_v7  ;;  %v2514_v9 = vpop.f32.mrb[82].mxu1  ;;  %2579 = vmatprep.mubr.msk.bf16.mxu0 %vm663_vm2, %v1144_v4 }
 0x21a   :  { %v998_v10 = vadd.f32 %v2514_v9, %v3068_v38  ;;  %v989_v11 = vpop.f32.mrb[83].mxu1  ;;  %2580 = vmatmul.mubr.msk.bf16.gmra.mrb[76].mxu0 %vm663_vm2, %v1145_v3  ;;  %v1099_v14 = vmax.f32 %v995_v6, 0.0 }
 0x21b   :  { %v990_v13 = vadd.f32 %v3068_v38, %v989_v11  ;;  %v1097_v19 = vmax.f32 %v987_v8, 0.0 }
 0x21c   :  { %v1100_v17 = vmax.f32 %v998_v10, 0.0 }
 0x21d   :  { %v1098_v20 = vmax.f32 %v990_v13, 0.0 }
 0x21e   :  { %v1147_v21 = vpack.c.bf16 %v1100_v17, %v1099_v14 }
 0x21f   :  { %v1146_v23 = vpack.c.bf16 %v1098_v20, %v1097_v19  ;;  %v2517_v24 = vpop.f32.mrb[84].mxu1 }
 0x220   :  { %v1011_v26 = vadd.f32 %v2517_v24, %v3068_v38  ;;  %v1002_v27 = vpop.f32.mrb[85].mxu1 }
 0x221   :  { %v1003_v28 = vadd.f32 %v3068_v38, %v1002_v27  ;;  %v2518_v29 = vpop.f32.mrb[86].mxu1  ;;  %2583 = vmatprep.mubr.msk.bf16.mxu0 %vm663_vm2, %v1146_v23 }
 0x222   :  { %v1014_v30 = vadd.f32 %v2518_v29, %v3068_v38  ;;  %v1005_v31 = vpop.f32.mrb[87].mxu1  ;;  %2584 = vmatmul.mubr.msk.bf16.gmra.mrb[80].mxu0 %vm663_vm2, %v1147_v21  ;;  %v1103_v25 = vmax.f32 %v1011_v26, 0.0 }
 0x223   :  { %v1006_v22 = vadd.f32 %v3068_v38, %v1005_v31  ;;  %v1101_v54 = vmax.f32 %v1003_v28, 0.0 }
 0x224   :  { %v1104_v51 = vmax.f32 %v1014_v30, 0.0 }
 0x225   :  { %v1102_v15 = vmax.f32 %v1006_v22, 0.0 }
 0x226   :  { %v1149_v18 = vpack.c.bf16 %v1104_v51, %v1103_v25 }
 0x227   :  { %v1148_v46 = vpack.c.bf16 %v1102_v15, %v1101_v54  ;;  %v2521_v49 = vpop.f32.mrb[88].mxu1 }
 0x228   :  { %v1027_v12 = vadd.f32 %v2521_v49, %v3068_v38  ;;  %v1018_v16 = vpop.f32.mrb[89].mxu1 }
 0x229   :  { %v1019_v32 = vadd.f32 %v3068_v38, %v1018_v16  ;;  %v2522_v33 = vpop.f32.mrb[90].mxu1  ;;  %2587 = vmatprep.mubr.msk.bf16.mxu0 %vm663_vm2, %v1148_v46 }
 0x22a   :  { %v1030_v34 = vadd.f32 %v2522_v33, %v3068_v38  ;;  %v1021_v35 = vpop.f32.mrb[91].mxu1  ;;  %2588 = vmatmul.mubr.msk.bf16.gmra.mrb[84].mxu0 %vm663_vm2, %v1149_v18  ;;  %v1107_v37 = vmax.f32 %v1027_v12, 0.0 }
 0x22b   :  { %v1022_v36 = vadd.f32 %v3068_v38, %v1021_v35  ;;  %v1105_v40 = vmax.f32 %v1019_v32, 0.0 }
 0x22c   :  { %v1108_v39 = vmax.f32 %v1030_v34, 0.0 }
 0x22d   :  { %v1106_v41 = vmax.f32 %v1022_v36, 0.0 }
 0x22e   :  { %v1151_v42 = vpack.c.bf16 %v1108_v39, %v1107_v37 }
 0x22f   :  { %v1150_v43 = vpack.c.bf16 %v1106_v41, %v1105_v40  ;;  %v2525_v44 = vpop.f32.mrb[92].mxu1 }
 0x230   :  { %v1043_v45 = vadd.f32 %v2525_v44, %v3068_v38  ;;  %v1034_v47 = vpop.f32.mrb[93].mxu1 }
 0x231   :  { %v1035_v48 = vadd.f32 %v3068_v38, %v1034_v47  ;;  %v2526_v50 = vpop.f32.mrb[94].mxu1  ;;  %2591 = vmatprep.mubr.msk.bf16.mxu0 %vm663_vm2, %v1150_v43 }
 0x232   :  { %v1046_v52 = vadd.f32 %v2526_v50, %v3068_v38  ;;  %v1037_v53 = vpop.f32.mrb[95].mxu1  ;;  %2592 = vmatmul.mubr.msk.bf16.gmra.mrb[88].mxu0 %vm663_vm2, %v1151_v42  ;;  %v1111_v56 = vmax.f32 %v1043_v45, 0.0 }
 0x233   :  { %v1038_v55 = vadd.f32 %v3068_v38, %v1037_v53  ;;  %v1109_v58 = vmax.f32 %v1035_v48, 0.0 }
 0x234   :  { %v1112_v57 = vmax.f32 %v1046_v52, 0.0 }
 0x235   :  { %v1110_v59 = vmax.f32 %v1038_v55, 0.0 }
 0x236   :  { %v1153_v60 = vpack.c.bf16 %v1112_v57, %v1111_v56 }
 0x237   :  { %v1152_v61 = vpack.c.bf16 %v1110_v59, %v1109_v58 }
 0x239   :  { %2595 = vmatprep.mubr.msk.bf16.mxu0 %vm663_vm2, %v1152_v61 }
 0x23a   :  { %2596 = vmatmul.mubr.msk.bf16.gmra.mrb[92].mxu0 %vm663_vm2, %v1153_v60 }
 0x295   :  { %v2537_v63 = vpop.f32.mrb[32].mxu0 }
 0x296   :  { %v1323_v0 = vadd.f32 %v2537_v63, %v3169_v62  ;;  %v1314_v1 = vpop.f32.mrb[33].mxu0 }
 0x297   :  { %v1315_v38 = vadd.f32 %v3169_v62, %v1314_v1  ;;  %v2538_v2 = vpop.f32.mrb[34].mxu0 }
 0x298   :  { %v1571_v3 = vmax.f32 %v1323_v0, 0.0  ;;  %v1326_v4 = vadd.f32 %v2538_v2, %v3169_v62  ;;  %v1317_v5 = vpop.f32.mrb[35].mxu0 }
 0x299   :  { %v1569_v6 = vmax.f32 %v1315_v38, 0.0  ;;  %v1318_v7 = vadd.f32 %v3169_v62, %v1317_v5 }
 0x29a   :  { %v1645_v8 = vrot.slane %v1571_v3, 4  ;;  %v1572_v9 = vmax.f32 %v1326_v4, 0.0 }
 0x29b   :  { %v1633_v10 = vrot.slane %v1569_v6, 4  ;;  %v1570_v11 = vmax.f32 %v1318_v7, 0.0 }
 0x29c   :  { %v1646_v13 = vmax.f32 %v1571_v3, %v1645_v8  ;;  %v1651_v14 = vrot.slane %v1572_v9, 4 }
 0x29d   :  { %v1634_v17 = vmax.f32 %v1569_v6, %v1633_v10  ;;  %v1639_v19 = vrot.slane %v1570_v11, 4  ;;  %v2541_v20 = vpop.f32.mrb[36].mxu0 }
 0x29e   :  { %v1647_v21 = vrot.slane %v1646_v13, 2  ;;  %v1652_v23 = vmax.f32 %v1572_v9, %v1651_v14  ;;  %v1339_v24 = vadd.f32 %v2541_v20, %v3169_v62  ;;  %v1330_v26 = vpop.f32.mrb[37].mxu0 }
 0x29f   :  { %v1635_v27 = vrot.slane %v1634_v17, 2  ;;  %v1640_v28 = vmax.f32 %v1570_v11, %v1639_v19  ;;  %v1331_v29 = vadd.f32 %v3169_v62, %v1330_v26  ;;  %v2542_v30 = vpop.f32.mrb[38].mxu0 }
 0x2a0   :  { %v1648_v31 = vmax.f32 %v1646_v13, %v1647_v21  ;;  %v1653_v22 = vrot.slane %v1652_v23, 2  ;;  %v1575_v25 = vmax.f32 %v1339_v24, 0.0  ;;  %v1342_v51 = vadd.f32 %v2542_v30, %v3169_v62  ;;  %v1333_v54 = vpop.f32.mrb[39].mxu0 }
 0x2a1   :  { %v1636_v15 = vmax.f32 %v1634_v17, %v1635_v27  ;;  %v1641_v18 = vrot.slane %v1640_v28, 2  ;;  %v1573_v46 = vmax.f32 %v1331_v29, 0.0  ;;  %v1334_v49 = vadd.f32 %v3169_v62, %v1333_v54 }
 0x2a2   :  { %v1649_v12 = vrot.slane %v1648_v31, 1  ;;  %v1654_v16 = vmax.f32 %v1652_v23, %v1653_v22  ;;  %v1669_v32 = vrot.slane %v1575_v25, 4  ;;  %v1576_v33 = vmax.f32 %v1342_v51, 0.0 }
 0x2a3   :  { %v1637_v34 = vrot.slane %v1636_v15, 1  ;;  %v1642_v35 = vmax.f32 %v1640_v28, %v1641_v18  ;;  %v1657_v36 = vrot.slane %v1573_v46, 4  ;;  %v1574_v37 = vmax.f32 %v1334_v49, 0.0 }
 0x2a4   :  { %v1650_v39 = vmax.f32 %v1648_v31, %v1649_v12  ;;  %v1655_v40 = vrot.slane %v1654_v16, 1  ;;  %v1670_v41 = vmax.f32 %v1575_v25, %v1669_v32  ;;  %v1675_v42 = vrot.slane %v1576_v33, 4 }
 0x2a5   :  { %v1638_v43 = vmax.f32 %v1636_v15, %v1637_v34  ;;  %v1643_v44 = vrot.slane %v1642_v35, 1  ;;  %v1658_v45 = vmax.f32 %v1573_v46, %v1657_v36  ;;  %v1663_v47 = vrot.slane %v1574_v37, 4  ;;  %v2545_v48 = vpop.f32.mrb[40].mxu0 }
 0x2a6   :  { %v1656_v50 = vmax.f32 %v1654_v16, %v1655_v40  ;;  %v1671_v52 = vrot.slane %v1670_v41, 2  ;;  %v1676_v53 = vmax.f32 %v1576_v33, %v1675_v42  ;;  %v1355_v55 = vadd.f32 %v2545_v48, %v3169_v62  ;;  %v1346_v56 = vpop.f32.mrb[41].mxu0 }
 0x2a7   :  { %v1644_v57 = vmax.f32 %v1642_v35, %v1643_v44  ;;  %v1659_v58 = vrot.slane %v1658_v45, 2  ;;  %v1664_v59 = vmax.f32 %v1574_v37, %v1663_v47  ;;  %v1347_v60 = vadd.f32 %v3169_v62, %v1346_v56  ;;  %v2546_v61 = vpop.f32.mrb[42].mxu0 }
 0x2a8   :  { %v1672_v63 = vmax.f32 %v1670_v41, %v1671_v52  ;;  %v1677_v0 = vrot.slane %v1676_v53, 2  ;;  %v1579_v1 = vmax.f32 %v1355_v55, 0.0  ;;  %v1358_v38 = vadd.f32 %v2546_v61, %v3169_v62  ;;  %v1349_v2 = vpop.f32.mrb[43].mxu0 }
 0x2a9   :  { %v2082_v3 = vsel %vm2081_vm3, %v1644_v57, %v1638_v43  ;;  %v1660_v4 = vmax.f32 %v1658_v45, %v1659_v58  ;;  %v1665_v5 = vrot.slane %v1664_v59, 2  ;;  %v1577_v6 = vmax.f32 %v1347_v60, 0.0 }
 0x2aa   :  { %v2084_v7 = vsel %vm2083_vm4, %v1650_v39, %v2082_v3  ;;  %v1673_v8 = vrot.slane %v1672_v63, 1  ;;  %v1678_v9 = vmax.f32 %v1676_v53, %v1677_v0  ;;  %v1693_v10 = vrot.slane %v1579_v1, 4 }
 0x2ab   :  { %v1661_v11 = vrot.slane %v1660_v4, 1  ;;  %v2086_v13 = vsel %vm2085_vm5, %v1656_v50, %v2084_v7  ;;  %v1666_v14 = vmax.f32 %v1664_v59, %v1665_v5  ;;  %v1681_v17 = vrot.slane %v1577_v6, 4 }
 0x2ac   :  { %v1674_v19 = vmax.f32 %v1672_v63, %v1673_v8  ;;  %v1679_v20 = vrot.slane %v1678_v9, 1  ;;  %v1694_v21 = vmax.f32 %v1579_v1, %v1693_v10  ;;  %v1580_v23 = vmax.f32 %v1358_v38, 0.0 }
 0x2ad   :  { %v1662_v24 = vmax.f32 %v1660_v4, %v1661_v11  ;;  %v1667_v26 = vrot.slane %v1666_v14, 1  ;;  %v1682_v27 = vmax.f32 %v1577_v6, %v1681_v17  ;;  %v1350_v28 = vadd.f32 %v3169_v62, %v1349_v2  ;;  %v2549_v29 = vpop.f32.mrb[44].mxu0 }
 0x2ae   :  { %v1680_v30 = vmax.f32 %v1678_v9, %v1679_v20  ;;  %v1695_v31 = vrot.slane %v1694_v21, 2  ;;  %v1699_v22 = vrot.slane %v1580_v23, 4  ;;  %v1371_v25 = vadd.f32 %v2549_v29, %v3169_v62  ;;  %v1362_v51 = vpop.f32.mrb[45].mxu0 }
 0x2af   :  { %v2088_v54 = vsel %vm2087_vm6, %v1662_v24, %v2086_v13  ;;  %v1668_v15 = vmax.f32 %v1666_v14, %v1667_v26  ;;  %v1683_v18 = vrot.slane %v1682_v27, 2  ;;  %v1578_v46 = vmax.f32 %v1350_v28, 0.0  ;;  %v2550_v49 = vpop.f32.mrb[46].mxu0 }
 0x2b0   :  { %v1696_v12 = vmax.f32 %v1694_v21, %v1695_v31  ;;  %v1700_v16 = vmax.f32 %v1580_v23, %v1699_v22  ;;  %v1583_v32 = vmax.f32 %v1371_v25, 0.0  ;;  %v1363_v33 = vadd.f32 %v3169_v62, %v1362_v51  ;;  %v1365_v34 = vpop.f32.mrb[47].mxu0 }
 0x2b1   :  { %v2090_v35 = vsel %vm2089_vm7, %v1668_v15, %v2088_v54  ;;  %v1684_v36 = vmax.f32 %v1682_v27, %v1683_v18  ;;  %v1687_v37 = vrot.slane %v1578_v46, 4  ;;  %v1374_v39 = vadd.f32 %v2550_v49, %v3169_v62 }
 0x2b2   :  { %v2092_v40 = vsel %vm2091_vm8, %v1674_v19, %v2090_v35  ;;  %v1697_v41 = vrot.slane %v1696_v12, 1  ;;  %v1701_v42 = vrot.slane %v1700_v16, 2  ;;  %v1717_v43 = vrot.slane %v1583_v32, 4 }
 0x2b3   :  { %v2094_v44 = vsel %vm2093_vm9, %v1680_v30, %v2092_v40  ;;  %v1688_v45 = vmax.f32 %v1578_v46, %v1687_v37  ;;  %v1581_v47 = vmax.f32 %v1363_v33, 0.0  ;;  %v1685_v48 = vrot.slane %v1684_v36, 1 }
 0x2b4   :  { %2152 = vst [vmem:[#allocation2] sm:$0xff] %v2094_v44  ;;  %v1702_v50 = vmax.f32 %v1700_v16, %v1701_v42  ;;  %v1718_v52 = vmax.f32 %v1583_v32, %v1717_v43  ;;  %v1584_v53 = vmax.f32 %v1374_v39, 0.0  ;;  %v1366_v57 = vadd.f32 %v3169_v62, %v1365_v34 }
 0x2b5   :  { %v1689_v55 = vrot.slane %v1688_v45, 2  ;;  %v1705_v56 = vrot.slane %v1581_v47, 4  ;;  %v2553_v58 = vpop.f32.mrb[48].mxu0  ;;  %v1698_v59 = vmax.f32 %v1696_v12, %v1697_v41  ;;  %v1686_v5 = vmax.f32 %v1684_v36, %v1685_v48 }
 0x2b6   :  { %v1719_v60 = vrot.slane %v1718_v52, 2  ;;  %v1723_v61 = vrot.slane %v1584_v53, 4  ;;  %v1387_v63 = vadd.f32 %v2553_v58, %v3169_v62  ;;  %v1378_v0 = vpop.f32.mrb[49].mxu0  ;;  %v1582_v2 = vmax.f32 %v1366_v57, 0.0 }
 0x2b7   :  { %v1690_v1 = vmax.f32 %v1688_v45, %v1689_v55  ;;  %v1706_v38 = vmax.f32 %v1581_v47, %v1705_v56  ;;  %v1379_v3 = vadd.f32 %v3169_v62, %v1378_v0  ;;  %v2554_v4 = vpop.f32.mrb[50].mxu0  ;;  %v1703_v6 = vrot.slane %v1702_v50, 1 }
 0x2b8   :  { %v1724_v7 = vmax.f32 %v1584_v53, %v1723_v61  ;;  %v1587_v8 = vmax.f32 %v1387_v63, 0.0  ;;  %v1381_v9 = vpop.f32.mrb[51].mxu0  ;;  %v1711_v13 = vrot.slane %v1582_v2, 4  ;;  %v1720_v17 = vmax.f32 %v1718_v52, %v1719_v60 }
 0x2b9   :  { %v1691_v10 = vrot.slane %v1690_v1, 1  ;;  %v1707_v11 = vrot.slane %v1706_v38, 2  ;;  %v1585_v14 = vmax.f32 %v1379_v3, 0.0  ;;  %v1390_v21 = vadd.f32 %v2554_v4, %v3169_v62 }
 0x2ba   :  { %v1725_v19 = vrot.slane %v1724_v7, 2  ;;  %v1741_v20 = vrot.slane %v1587_v8, 4  ;;  %v1712_v26 = vmax.f32 %v1582_v2, %v1711_v13  ;;  %v1704_v28 = vmax.f32 %v1702_v50, %v1703_v6 }
 0x2bb   :  { %v1692_v23 = vmax.f32 %v1690_v1, %v1691_v10  ;;  %v1708_v24 = vmax.f32 %v1706_v38, %v1707_v11  ;;  %v1729_v27 = vrot.slane %v1585_v14, 4  ;;  %v1588_v31 = vmax.f32 %v1390_v21, 0.0 }
 0x2bc   :  { %v1726_v29 = vmax.f32 %v1724_v7, %v1725_v19  ;;  %v1742_v30 = vmax.f32 %v1587_v8, %v1741_v20  ;;  %v1713_v51 = vrot.slane %v1712_v26, 2  ;;  %v1721_v46 = vrot.slane %v1720_v17, 1 }
 0x2bd   :  { %v2095_v22 = vsel %vm2081_vm3, %v1692_v23, %v1686_v5  ;;  %v1709_v25 = vrot.slane %v1708_v24, 1  ;;  %v1730_v54 = vmax.f32 %v1585_v14, %v1729_v27  ;;  %v2557_v15 = vpop.f32.mrb[52].mxu0  ;;  %v1747_v12 = vrot.slane %v1588_v31, 4 }
 0x2be   :  { %v2096_v18 = vsel %vm2083_vm4, %v1698_v59, %v2095_v22  ;;  %v1743_v49 = vrot.slane %v1742_v30, 2  ;;  %v1394_v16 = vpop.f32.mrb[53].mxu0  ;;  %v1714_v34 = vmax.f32 %v1712_v26, %v1713_v51  ;;  %v1727_v37 = vrot.slane %v1726_v29, 1 }
 0x2bf   :  { %v1710_v32 = vmax.f32 %v1708_v24, %v1709_v25  ;;  %v2097_v33 = vsel %vm2085_vm5, %v1704_v28, %v2096_v18  ;;  %v1731_v35 = vrot.slane %v1730_v54, 2  ;;  %v2558_v36 = vpop.f32.mrb[54].mxu0  ;;  %v1748_v40 = vmax.f32 %v1588_v31, %v1747_v12 }
 0x2c0   :  { %v1744_v39 = vmax.f32 %v1742_v30, %v1743_v49  ;;  %v1382_v41 = vadd.f32 %v3169_v62, %v1381_v9  ;;  %v1397_v42 = vpop.f32.mrb[55].mxu0  ;;  %v1715_v44 = vrot.slane %v1714_v34, 1  ;;  %v1403_v47 = vadd.f32 %v2557_v15, %v3169_v62 }
 0x2c1   :  { %v2098_v43 = vsel %vm2087_vm6, %v1710_v32, %v2097_v33  ;;  %v1732_v45 = vmax.f32 %v1730_v54, %v1731_v35  ;;  %v1749_v50 = vrot.slane %v1748_v40, 2  ;;  %v1395_v53 = vadd.f32 %v3169_v62, %v1394_v16 }
 0x2c2   :  { %v1745_v48 = vrot.slane %v1744_v39, 1  ;;  %v1586_v52 = vmax.f32 %v1382_v41, 0.0  ;;  %v1722_v55 = vmax.f32 %v1720_v17, %v1721_v46  ;;  %v1716_v56 = vmax.f32 %v1714_v34, %v1715_v44 }
 0x2c3   :  { %v1591_v57 = vmax.f32 %v1403_v47, 0.0  ;;  %v1406_v58 = vadd.f32 %v2558_v36, %v3169_v62  ;;  %v1728_v59 = vmax.f32 %v1726_v29, %v1727_v37  ;;  %v1750_v60 = vmax.f32 %v1748_v40, %v1749_v50 }
 0x2c4   :  { %v1735_v61 = vrot.slane %v1586_v52, 4  ;;  %v1589_v63 = vmax.f32 %v1395_v53, 0.0  ;;  %v2099_v0 = vsel %vm2089_vm7, %v1716_v56, %v2098_v43  ;;  %v1733_v1 = vrot.slane %v1732_v45, 1 }
 0x2c5   :  { %v1765_v38 = vrot.slane %v1591_v57, 4  ;;  %v1592_v2 = vmax.f32 %v1406_v58, 0.0  ;;  %v2561_v3 = vpop.f32.mrb[56].mxu0  ;;  %v2100_v4 = vsel %vm2091_vm8, %v1722_v55, %v2099_v0  ;;  %v1746_v5 = vmax.f32 %v1744_v39, %v1745_v48 }
 0x2c6   :  { %v1736_v6 = vmax.f32 %v1586_v52, %v1735_v61  ;;  %v1753_v7 = vrot.slane %v1589_v63, 4  ;;  %v1410_v8 = vpop.f32.mrb[57].mxu0  ;;  %v2101_v9 = vsel %vm2093_vm9, %v1728_v59, %v2100_v4  ;;  %v1398_v13 = vadd.f32 %v3169_v62, %v1397_v42 }
 0x2c7   :  { %v1766_v10 = vmax.f32 %v1591_v57, %v1765_v38  ;;  %v1771_v11 = vrot.slane %v1592_v2, 4  ;;  %v2562_v14 = vpop.f32.mrb[58].mxu0  ;;  %2153 = vst [vmem:[#allocation2 + $0x8] sm:$0xff] %v2101_v9  ;;  %v1751_v17 = vrot.slane %v1750_v60, 1  ;;  %v1419_v21 = vadd.f32 %v2561_v3, %v3169_v62 }
 0x2c8   :  { %v1737_v19 = vrot.slane %v1736_v6, 2  ;;  %v1754_v20 = vmax.f32 %v1589_v63, %v1753_v7  ;;  %v1413_v23 = vpop.f32.mrb[59].mxu0  ;;  %v1590_v27 = vmax.f32 %v1398_v13, 0.0  ;;  %v1411_v28 = vadd.f32 %v3169_v62, %v1410_v8 }
 0x2c9   :  { %v1767_v24 = vrot.slane %v1766_v10, 2  ;;  %v1772_v26 = vmax.f32 %v1592_v2, %v1771_v11  ;;  %v1595_v31 = vmax.f32 %v1419_v21, 0.0  ;;  %v1422_v22 = vadd.f32 %v2562_v14, %v3169_v62 }
 0x2ca   :  { %v1738_v29 = vmax.f32 %v1736_v6, %v1737_v19  ;;  %v1755_v30 = vrot.slane %v1754_v20, 2  ;;  %v1759_v54 = vrot.slane %v1590_v27, 4  ;;  %v1593_v15 = vmax.f32 %v1411_v28, 0.0 }
 0x2cb   :  { %v1768_v25 = vmax.f32 %v1766_v10, %v1767_v24  ;;  %v1773_v51 = vrot.slane %v1772_v26, 2  ;;  %v1789_v49 = vrot.slane %v1595_v31, 4  ;;  %v1596_v12 = vmax.f32 %v1422_v22, 0.0 }
 0x2cc   :  { %v1739_v18 = vrot.slane %v1738_v29, 1  ;;  %v1756_v46 = vmax.f32 %v1754_v20, %v1755_v30  ;;  %v1734_v16 = vmax.f32 %v1732_v45, %v1733_v1  ;;  %v1760_v33 = vmax.f32 %v1590_v27, %v1759_v54 }
 0x2cd   :  { %v1774_v32 = vmax.f32 %v1772_v26, %v1773_v51  ;;  %v1777_v34 = vrot.slane %v1593_v15, 4  ;;  %v2565_v35 = vpop.f32.mrb[60].mxu0  ;;  %v1790_v39 = vmax.f32 %v1595_v31, %v1789_v49  ;;  %v1795_v40 = vrot.slane %v1596_v12, 4 }
 0x2ce   :  { %v1740_v36 = vmax.f32 %v1738_v29, %v1739_v18  ;;  %v1757_v37 = vrot.slane %v1756_v46, 1  ;;  %v1426_v41 = vpop.f32.mrb[61].mxu0  ;;  %v1752_v42 = vmax.f32 %v1750_v60, %v1751_v17  ;;  %v1769_v43 = vrot.slane %v1768_v25, 1 }
 0x2cf   :  { %v1761_v44 = vrot.slane %v1760_v33, 2  ;;  %v1778_v47 = vmax.f32 %v1593_v15, %v1777_v34  ;;  %v2566_v48 = vpop.f32.mrb[62].mxu0  ;;  %v1791_v53 = vrot.slane %v1790_v39, 2  ;;  %v1796_v55 = vmax.f32 %v1596_v12, %v1795_v40 }
 0x2d0   :  { %v2102_v50 = vsel %vm2081_vm3, %v1740_v36, %v1734_v16  ;;  %v1758_v52 = vmax.f32 %v1756_v46, %v1757_v37  ;;  %v1429_v45 = vpop.f32.mrb[63].mxu0  ;;  %v1775_v57 = vrot.slane %v1774_v32, 1  ;;  %v1414_v60 = vadd.f32 %v3169_v62, %v1413_v23 }
 0x2d1   :  { %v2103_v56 = vsel %vm2083_vm4, %v1746_v5, %v2102_v50  ;;  %v1762_v58 = vmax.f32 %v1760_v33, %v1761_v44  ;;  %v1779_v59 = vrot.slane %v1778_v47, 2  ;;  %v1792_v63 = vmax.f32 %v1790_v39, %v1791_v53 }
 0x2d2   :  { %v2104_v61 = vsel %vm2085_vm5, %v1752_v42, %v2103_v56  ;;  %v1797_v0 = vrot.slane %v1796_v55, 2  ;;  %v1435_v3 = vadd.f32 %v2565_v35, %v3169_v62  ;;  %v1594_v7 = vmax.f32 %v1414_v60, 0.0 }
 0x2d3   :  { %v2105_v1 = vsel %vm2087_vm6, %v1758_v52, %v2104_v61  ;;  %v1763_v38 = vrot.slane %v1762_v58, 1  ;;  %v1780_v2 = vmax.f32 %v1778_v47, %v1779_v59  ;;  %v1793_v4 = vrot.slane %v1792_v63, 1 }
 0x2d4   :  { %v1798_v6 = vmax.f32 %v1796_v55, %v1797_v0  ;;  %v1427_v5 = vadd.f32 %v3169_v62, %v1426_v41  ;;  %v1770_v8 = vmax.f32 %v1768_v25, %v1769_v43  ;;  %v1599_v10 = vmax.f32 %v1435_v3, 0.0 }
 0x2d5   :  { %v1764_v9 = vmax.f32 %v1762_v58, %v1763_v38  ;;  %v1438_v11 = vadd.f32 %v2566_v48, %v3169_v62  ;;  %v2569_v13 = vpop.f32.mrb[64].mxu0  ;;  %v1776_v14 = vmax.f32 %v1774_v32, %v1775_v57  ;;  %v1781_v17 = vrot.slane %v1780_v2, 1 }
 0x2d6   :  { %v1783_v19 = vrot.slane %v1594_v7, 4  ;;  %v1597_v20 = vmax.f32 %v1427_v5, 0.0  ;;  %v1442_v21 = vpop.f32.mrb[65].mxu0  ;;  %v1794_v24 = vmax.f32 %v1792_v63, %v1793_v4  ;;  %v1813_v26 = vrot.slane %v1599_v10, 4 }
 0x2d7   :  { %v2106_v23 = vsel %vm2089_vm7, %v1764_v9, %v2105_v1  ;;  %v1600_v27 = vmax.f32 %v1438_v11, 0.0  ;;  %v2570_v28 = vpop.f32.mrb[66].mxu0  ;;  %v1799_v30 = vrot.slane %v1798_v6, 1  ;;  %v1430_v18 = vadd.f32 %v3169_v62, %v1429_v45 }
 0x2d8   :  { %v2107_v29 = vsel %vm2091_vm8, %v1770_v8, %v2106_v23  ;;  %v1784_v31 = vmax.f32 %v1594_v7, %v1783_v19  ;;  %v1801_v22 = vrot.slane %v1597_v20, 4  ;;  %v1445_v25 = vpop.f32.mrb[67].mxu0  ;;  %v1814_v54 = vmax.f32 %v1599_v10, %v1813_v26 }
 0x2d9   :  { %v2108_v51 = vsel %vm2093_vm9, %v1776_v14, %v2107_v29  ;;  %v1819_v15 = vrot.slane %v1600_v27, 4  ;;  %v1451_v12 = vadd.f32 %v2569_v13, %v3169_v62  ;;  %v1443_v16 = vadd.f32 %v3169_v62, %v1442_v21 }
 0x2da   :  { %2154 = vst [vmem:[#allocation2 + $0x10] sm:$0xff] %v2108_v51  ;;  %v1785_v46 = vrot.slane %v1784_v31, 2  ;;  %v1802_v49 = vmax.f32 %v1597_v20, %v1801_v22  ;;  %v1815_v32 = vrot.slane %v1814_v54, 2  ;;  %v1598_v34 = vmax.f32 %v1430_v18, 0.0 }
 0x2db   :  { %v1820_v33 = vmax.f32 %v1600_v27, %v1819_v15  ;;  %v1454_v35 = vadd.f32 %v2570_v28, %v3169_v62  ;;  %v1603_v39 = vmax.f32 %v1451_v12, 0.0  ;;  %v1601_v40 = vmax.f32 %v1443_v16, 0.0 }
 0x2dc   :  { %v1786_v36 = vmax.f32 %v1784_v31, %v1785_v46  ;;  %v1803_v37 = vrot.slane %v1802_v49, 2  ;;  %v1816_v41 = vmax.f32 %v1814_v54, %v1815_v32  ;;  %v1807_v43 = vrot.slane %v1598_v34, 4 }
 0x2dd   :  { %v1821_v42 = vrot.slane %v1820_v33, 2  ;;  %v1604_v44 = vmax.f32 %v1454_v35, 0.0  ;;  %v2573_v47 = vpop.f32.mrb[68].mxu0  ;;  %v1837_v52 = vrot.slane %v1603_v39, 4  ;;  %v1825_v53 = vrot.slane %v1601_v40, 4 }
 0x2de   :  { %v1787_v48 = vrot.slane %v1786_v36, 1  ;;  %v1804_v50 = vmax.f32 %v1802_v49, %v1803_v37  ;;  %v1458_v55 = vpop.f32.mrb[69].mxu0  ;;  %v1782_v45 = vmax.f32 %v1780_v2, %v1781_v17  ;;  %v1808_v57 = vmax.f32 %v1598_v34, %v1807_v43 }
 0x2df   :  { %v1822_v56 = vmax.f32 %v1820_v33, %v1821_v42  ;;  %v1843_v58 = vrot.slane %v1604_v44, 4  ;;  %v2574_v59 = vpop.f32.mrb[70].mxu0  ;;  %v1838_v0 = vmax.f32 %v1603_v39, %v1837_v52  ;;  %v1826_v60 = vmax.f32 %v1601_v40, %v1825_v53 }
 0x2e0   :  { %v1788_v61 = vmax.f32 %v1786_v36, %v1787_v48  ;;  %v1805_v63 = vrot.slane %v1804_v50, 1  ;;  %v1461_v1 = vpop.f32.mrb[71].mxu0  ;;  %v1800_v38 = vmax.f32 %v1798_v6, %v1799_v30  ;;  %v1817_v3 = vrot.slane %v1816_v41, 1 }
 0x2e1   :  { %v1809_v4 = vrot.slane %v1808_v57, 2  ;;  %v1844_v7 = vmax.f32 %v1604_v44, %v1843_v58  ;;  %v1839_v9 = vrot.slane %v1838_v0, 2  ;;  %v1827_v10 = vrot.slane %v1826_v60, 2 }
 0x2e2   :  { %v2109_v5 = vsel %vm2081_vm3, %v1788_v61, %v1782_v45  ;;  %v1806_v8 = vmax.f32 %v1804_v50, %v1805_v63  ;;  %v1823_v11 = vrot.slane %v1822_v56, 1  ;;  %v1446_v21 = vadd.f32 %v3169_v62, %v1445_v25 }
 0x2e3   :  { %v2110_v2 = vsel %vm2083_vm4, %v1794_v24, %v2109_v5  ;;  %v1810_v13 = vmax.f32 %v1808_v57, %v1809_v4  ;;  %v1845_v14 = vrot.slane %v1844_v7, 2  ;;  %v1840_v19 = vmax.f32 %v1838_v0, %v1839_v9 }
 0x2e4   :  { %v2111_v17 = vsel %vm2085_vm5, %v1800_v38, %v2110_v2  ;;  %v1828_v20 = vmax.f32 %v1826_v60, %v1827_v10  ;;  %v1467_v27 = vadd.f32 %v2573_v47, %v3169_v62  ;;  %v1818_v29 = vmax.f32 %v1816_v41, %v1817_v3 }
 0x2e5   :  { %v2112_v6 = vsel %vm2087_vm6, %v1806_v8, %v2111_v17  ;;  %v1811_v23 = vrot.slane %v1810_v13, 1  ;;  %v3232_v26 = vmax.f32 %v1844_v7, %v1845_v14  ;;  %v2577_v28 = vpop.f32.mrb[72].mxu0  ;;  %v1841_v30 = vrot.slane %v1840_v19, 1 }
 0x2e6   :  { %v1602_v24 = vmax.f32 %v1446_v21, 0.0  ;;  %v1459_v31 = vadd.f32 %v3169_v62, %v1458_v55  ;;  %v1474_v22 = vpop.f32.mrb[73].mxu0  ;;  %v1824_v51 = vmax.f32 %v1822_v56, %v1823_v11  ;;  %v1607_v15 = vmax.f32 %v1467_v27, 0.0 }
 0x2e7   :  { %v1812_v54 = vmax.f32 %v1810_v13, %v1811_v23  ;;  %v1470_v18 = vadd.f32 %v2574_v59, %v3169_v62  ;;  %v2578_v25 = vpop.f32.mrb[74].mxu0  ;;  %v1829_v46 = vrot.slane %v1828_v20, 1  ;;  %v1847_v49 = vrot.slane %v3232_v26, 1 }
 0x2e8   :  { %v1831_v12 = vrot.slane %v1602_v24, 4  ;;  %v1605_v16 = vmax.f32 %v1459_v31, 0.0  ;;  %v1477_v32 = vpop.f32.mrb[75].mxu0  ;;  %v1842_v34 = vmax.f32 %v1840_v19, %v1841_v30  ;;  %v1861_v35 = vrot.slane %v1607_v15, 4 }
 0x2e9   :  { %v2113_v33 = vsel %vm2089_vm7, %v1812_v54, %v2112_v6  ;;  %v1608_v36 = vmax.f32 %v1470_v18, 0.0  ;;  %v1462_v41 = vadd.f32 %v3169_v62, %v1461_v1  ;;  %v1483_v47 = vadd.f32 %v2577_v28, %v3169_v62 }
 0x2ea   :  { %v2114_v37 = vsel %vm2091_vm8, %v1818_v29, %v2113_v33  ;;  %v1832_v39 = vmax.f32 %v1602_v24, %v1831_v12  ;;  %v1849_v40 = vrot.slane %v1605_v16, 4  ;;  %v1862_v43 = vmax.f32 %v1607_v15, %v1861_v35 }
 0x2eb   :  { %v2115_v42 = vsel %vm2093_vm9, %v1824_v51, %v2114_v37  ;;  %v1867_v44 = vrot.slane %v1608_v36, 4  ;;  %v1606_v52 = vmax.f32 %v1462_v41, 0.0  ;;  %v1475_v53 = vadd.f32 %v3169_v62, %v1474_v22 }
 0x2ec   :  { %2155 = vst [vmem:[#allocation2 + $0x18] sm:$0xff] %v2115_v42  ;;  %v1833_v48 = vrot.slane %v1832_v39, 2  ;;  %v1850_v50 = vmax.f32 %v1605_v16, %v1849_v40  ;;  %v1863_v55 = vrot.slane %v1862_v43, 2  ;;  %v1611_v56 = vmax.f32 %v1483_v47, 0.0 }
 0x2ed   :  { %v1868_v45 = vmax.f32 %v1608_v36, %v1867_v44  ;;  %v1486_v57 = vadd.f32 %v2578_v25, %v3169_v62  ;;  %v2581_v58 = vpop.f32.mrb[76].mxu0  ;;  %v1855_v63 = vrot.slane %v1606_v52, 4  ;;  %v1609_v0 = vmax.f32 %v1475_v53, 0.0 }
 0x2ee   :  { %v1834_v59 = vmax.f32 %v1832_v39, %v1833_v48  ;;  %v1851_v61 = vrot.slane %v1850_v50, 2  ;;  %v1490_v60 = vpop.f32.mrb[77].mxu0  ;;  %v1864_v1 = vmax.f32 %v1862_v43, %v1863_v55  ;;  %v1885_v3 = vrot.slane %v1611_v56, 4 }
 0x2ef   :  { %v1869_v38 = vrot.slane %v1868_v45, 2  ;;  %v1612_v4 = vmax.f32 %v1486_v57, 0.0  ;;  %v2582_v7 = vpop.f32.mrb[78].mxu0  ;;  %v1856_v9 = vmax.f32 %v1606_v52, %v1855_v63  ;;  %v1873_v10 = vrot.slane %v1609_v0, 4 }
 0x2f0   :  { %v1835_v5 = vrot.slane %v1834_v59, 1  ;;  %v1852_v8 = vmax.f32 %v1850_v50, %v1851_v61  ;;  %v1493_v2 = vpop.f32.mrb[79].mxu0  ;;  %v1830_v11 = vmax.f32 %v1828_v20, %v1829_v46  ;;  %v1886_v14 = vmax.f32 %v1611_v56, %v1885_v3 }
 0x2f1   :  { %v1870_v13 = vmax.f32 %v1868_v45, %v1869_v38  ;;  %v1891_v17 = vrot.slane %v1612_v4, 4  ;;  %v1857_v6 = vrot.slane %v1856_v9, 2  ;;  %v1874_v23 = vmax.f32 %v1609_v0, %v1873_v10 }
 0x2f2   :  { %v1836_v19 = vmax.f32 %v1834_v59, %v1835_v5  ;;  %v1853_v21 = vrot.slane %v1852_v8, 1  ;;  %v1848_v27 = vmax.f32 %v3232_v26, %v1847_v49  ;;  %v1865_v28 = vrot.slane %v1864_v1, 1 }
 0x2f3   :  { %v1887_v29 = vrot.slane %v1886_v14, 2  ;;  %v1892_v30 = vmax.f32 %v1612_v4, %v1891_v17  ;;  %v1858_v22 = vmax.f32 %v1856_v9, %v1857_v6  ;;  %v1875_v51 = vrot.slane %v1874_v23, 2 }
 0x2f4   :  { %v2116_v24 = vsel %vm2081_vm3, %v1836_v19, %v1830_v11  ;;  %v1854_v31 = vmax.f32 %v1852_v8, %v1853_v21  ;;  %v1871_v20 = vrot.slane %v1870_v13, 1  ;;  %v1478_v26 = vadd.f32 %v3169_v62, %v1477_v32 }
 0x2f5   :  { %v2117_v54 = vsel %vm2083_vm4, %v1842_v34, %v2116_v24  ;;  %v3248_v15 = vmax.f32 %v1886_v14, %v1887_v29  ;;  %v1893_v18 = vrot.slane %v1892_v30, 2  ;;  %v2585_v25 = vpop.f32.mrb[80].mxu0  ;;  %v1859_v12 = vrot.slane %v1858_v22, 1 }
 0x2f6   :  { %v2118_v46 = vsel %vm2085_vm5, %v1848_v27, %v2117_v54  ;;  %v1876_v16 = vmax.f32 %v1874_v23, %v1875_v51  ;;  %v1506_v49 = vpop.f32.mrb[81].mxu0  ;;  %v1499_v36 = vadd.f32 %v2581_v58, %v3169_v62  ;;  %v1866_v39 = vmax.f32 %v1864_v1, %v1865_v28 }
 0x2f7   :  { %v2119_v33 = vsel %vm2087_vm6, %v1854_v31, %v2118_v46  ;;  %v1894_v35 = vmax.f32 %v1892_v30, %v1893_v18  ;;  %v2586_v37 = vpop.f32.mrb[82].mxu0  ;;  %v1860_v34 = vmax.f32 %v1858_v22, %v1859_v12  ;;  %v1610_v40 = vmax.f32 %v1478_v26, 0.0 }
 0x2f8   :  { %v1491_v41 = vadd.f32 %v3169_v62, %v1490_v60  ;;  %v3255_v42 = vpop.f32.mrb[83].mxu0  ;;  %v1872_v43 = vmax.f32 %v1870_v13, %v1871_v20  ;;  %v1889_v44 = vrot.slane %v3248_v15, 1  ;;  %v1615_v47 = vmax.f32 %v1499_v36, 0.0 }
 0x2f9   :  { %v1502_v32 = vadd.f32 %v2582_v7, %v3169_v62  ;;  %v2120_v48 = vsel %vm2089_vm7, %v1860_v34, %v2119_v33  ;;  %v1877_v50 = vrot.slane %v1876_v16, 1  ;;  %v1879_v52 = vrot.slane %v1610_v40, 4 }
 0x2fa   :  { %v1613_v53 = vmax.f32 %v1491_v41, 0.0  ;;  %v2121_v55 = vsel %vm2091_vm8, %v1866_v39, %v2120_v48  ;;  %v1895_v45 = vrot.slane %v1894_v35, 1  ;;  %v1909_v56 = vrot.slane %v1615_v47, 4 }
 0x2fb   :  { %v1616_v57 = vmax.f32 %v1502_v32, 0.0  ;;  %v2122_v58 = vsel %vm2093_vm9, %v1872_v43, %v2121_v55  ;;  %v1880_v59 = vmax.f32 %v1610_v40, %v1879_v52  ;;  %v1494_v63 = vadd.f32 %v3169_v62, %v1493_v2 }
 0x2fc   :  { %v1897_v61 = vrot.slane %v1613_v53, 4  ;;  %2156 = vst [vmem:[#allocation2 + $0x20] sm:$0xff] %v2122_v58  ;;  %v1910_v0 = vmax.f32 %v1615_v47, %v1909_v56  ;;  %v1515_v1 = vadd.f32 %v2585_v25, %v3169_v62  ;;  %v1507_v38 = vadd.f32 %v3169_v62, %v1506_v49 }
 0x2fd   :  { %v1915_v60 = vrot.slane %v1616_v57, 4  ;;  %v2589_v3 = vpop.f32.mrb[84].mxu0  ;;  %v1881_v4 = vrot.slane %v1880_v59, 2  ;;  %v1614_v5 = vmax.f32 %v1494_v63, 0.0  ;;  %v1518_v8 = vadd.f32 %v2586_v37, %v3169_v62  ;;  %v3279_v63 = vld [vmem:[%s3328_s6] ss:$0 sm:$0xff] }
 0x2fe   :  { %v1898_v7 = vmax.f32 %v1613_v53, %v1897_v61  ;;  %v1522_v9 = vpop.f32.mrb[85].mxu0  ;;  %v1911_v10 = vrot.slane %v1910_v0, 2  ;;  %v1619_v13 = vmax.f32 %v1515_v1, 0.0  ;;  %v1617_v14 = vmax.f32 %v1507_v38, 0.0  ;;  %s2640_s6 = smov [#allocation2]  }
 0x2ff   :  { %v1916_v11 = vmax.f32 %v1616_v57, %v1915_v60  ;;  %v2590_v17 = vpop.f32.mrb[86].mxu0  ;;  %v1882_v2 = vmax.f32 %v1880_v59, %v1881_v4  ;;  %v1903_v21 = vrot.slane %v1614_v5, 4  ;;  %v1620_v6 = vmax.f32 %v1518_v8, 0.0  ;;  %s2165_s27 = sshll.u32 %s2640_s6, 4  ;;  %s2166_s27 = int_to_ptr.vmem [resolvable:$true] %s2165_s27 }
 0x300   :  { %v1899_v19 = vrot.slane %v1898_v7, 2  ;;  %v1525_v23 = vpop.f32.mrb[87].mxu0  ;;  %v1912_v27 = vmax.f32 %v1910_v0, %v1911_v10  ;;  %v1933_v29 = vrot.slane %v1619_v13, 4  ;;  %v1921_v30 = vrot.slane %v1617_v14, 4  ;;  %s2616_s28 = scalar_lea.vmem %s2166_s27, 1024  ;;  %p2621_p1 = scmp.lt.s32.totalorder %s2166_s27, %s2166_s27 }
 0x301   :  { %v1917_v28 = vrot.slane %v1916_v11, 2  ;;  %v1883_v24 = vrot.slane %v1882_v2, 1  ;;  %v1904_v22 = vmax.f32 %v1614_v5, %v1903_v21  ;;  %v1939_v51 = vrot.slane %v1620_v6, 4  ;;  %p2617_p0 = scmp.ne.s32.totalorder %s2166_s27, %s2616_s28  ;;  %p2622_p2 = scmp.lt.s32.totalorder %s2616_s28, %s2616_s28 }
 0x302   :  { %v1900_v31 = vmax.f32 %v1898_v7, %v1899_v19  ;;  %v1878_v54 = vmax.f32 %v1876_v16, %v1877_v50  ;;  %v1934_v18 = vmax.f32 %v1619_v13, %v1933_v29  ;;  %v1922_v25 = vmax.f32 %v1617_v14, %v1921_v30 }
 0x303   :  { %v1918_v20 = vmax.f32 %v1916_v11, %v1917_v28  ;;  %v1884_v46 = vmax.f32 %v1882_v2, %v1883_v24  ;;  %v1905_v26 = vrot.slane %v1904_v22, 2  ;;  %v1940_v49 = vmax.f32 %v1620_v6, %v1939_v51  ;;  %p2623_p3 = por %p2622_p2, %p2621_p1 }
 0x304   :  { %v1901_v12 = vrot.slane %v1900_v31, 1  ;;  %v1890_v33 = vmax.f32 %v3248_v15, %v1889_v44  ;;  %v1896_v36 = vmax.f32 %v1894_v35, %v1895_v45  ;;  %v1913_v37 = vrot.slane %v1912_v27, 1 }
 0x305   :  { %v1935_v39 = vrot.slane %v1934_v18, 2  ;;  %v2593_v34 = vpop.f32.mrb[88].mxu0  ;;  %v2123_v40 = vsel %vm2081_vm3, %v1884_v46, %v1878_v54  ;;  %v1919_v43 = vrot.slane %v1918_v20, 1  ;;  %v1906_v47 = vmax.f32 %v1904_v22, %v1905_v26  ;;  %p2624_p4 = pnand %p2623_p3, %p2617_p0 }
 0x306   :  { %v1902_v41 = vmax.f32 %v1900_v31, %v1901_v12  ;;  %v1538_v32 = vpop.f32.mrb[89].mxu0  ;;  %v2124_v16 = vsel %vm2083_vm4, %v1890_v33, %v2123_v40  ;;  %v1923_v48 = vrot.slane %v1922_v25, 2  ;;  %v1941_v50 = vrot.slane %v1940_v49, 2 }
 0x307   :  { %v2594_v52 = vpop.f32.mrb[90].mxu0  ;;  %v2125_v53 = vsel %vm2085_vm5, %v1896_v36, %v2124_v16  ;;  %v1907_v55 = vrot.slane %v1906_v47, 1  ;;  %v1936_v56 = vmax.f32 %v1934_v18, %v1935_v39  ;;  %v1510_v15 = vadd.f32 %v3169_v62, %v3255_v42 }
 0x308   :  { %v3272_v35 = vpop.f32.mrb[91].mxu0  ;;  %v1914_v44 = vmax.f32 %v1912_v27, %v1913_v37  ;;  %v2126_v45 = vsel %vm2087_vm6, %v1902_v41, %v2125_v53  ;;  %v1531_v57 = vadd.f32 %v2589_v3, %v3169_v62  ;;  %v1920_v58 = vmax.f32 %v1918_v20, %v1919_v43 }
 0x309   :  { %v1908_v59 = vmax.f32 %v1906_v47, %v1907_v55  ;;  %v1618_v61 = vmax.f32 %v1510_v15, 0.0  ;;  %v1523_v0 = vadd.f32 %v3279_v63, %v1522_v9  ;;  %v1924_v60 = vmax.f32 %v1922_v25, %v1923_v48 }
 0x30a   :  { %v1942_v1 = vmax.f32 %v1940_v49, %v1941_v50  ;;  %v1623_v42 = vmax.f32 %v1531_v57, 0.0  ;;  %v1534_v38 = vadd.f32 %v3279_v63, %v2590_v17  ;;  %v1937_v7 = vrot.slane %v1936_v56, 1 }
 0x30b   :  { %v2127_v4 = vsel %vm2089_vm7, %v1908_v59, %v2126_v45  ;;  %v1927_v5 = vrot.slane %v1618_v61, 4  ;;  %v1621_v62 = vmax.f32 %v1523_v0, 0.0  ;;  %v1526_v11 = vadd.f32 %v3279_v63, %v1525_v23 }
 0x30c   :  { %v2128_v3 = vsel %vm2091_vm8, %v1914_v44, %v2127_v4  ;;  %v1957_v8 = vrot.slane %v1623_v42, 4  ;;  %v1624_v10 = vmax.f32 %v1534_v38, 0.0  ;;  %v1547_v19 = vadd.f32 %v3279_v63, %v2593_v34 }
 0x30d   :  { %v2597_v13 = vpop.f32.mrb[92].mxu0  ;;  %v2129_v14 = vsel %vm2093_vm9, %v1920_v58, %v2128_v3  ;;  %v1928_v9 = vmax.f32 %v1618_v61, %v1927_v5  ;;  %v1945_v2 = vrot.slane %v1621_v62, 4  ;;  %v1622_v27 = vmax.f32 %v1526_v11, 0.0 }
 0x30e   :  { %v1554_v21 = vpop.f32.mrb[93].mxu0  ;;  %2157 = vst [vmem:[#allocation2 + $0x28] sm:$0xff] %v2129_v14  ;;  %v1958_v17 = vmax.f32 %v1623_v42, %v1957_v8  ;;  %v1963_v6 = vrot.slane %v1624_v10, 4  ;;  %v1539_v28 = vadd.f32 %v3279_v63, %v1538_v32  ;;  %v1627_v31 = vmax.f32 %v1547_v19, 0.0 }
 0x30f   :  { %v2598_v29 = vpop.f32.mrb[94].mxu0  ;;  %v1929_v30 = vrot.slane %v1928_v9, 2  ;;  %v1946_v24 = vmax.f32 %v1621_v62, %v1945_v2  ;;  %v1550_v23 = vadd.f32 %v3279_v63, %v2594_v52  ;;  %v1951_v20 = vrot.slane %v1622_v27, 4 }
 0x310   :  { %v1557_v22 = vpop.f32.mrb[95].mxu0  ;;  %v1959_v51 = vrot.slane %v1958_v17, 2  ;;  %v1964_v54 = vmax.f32 %v1624_v10, %v1963_v6  ;;  %v1625_v18 = vmax.f32 %v1539_v28, 0.0  ;;  %v1925_v25 = vrot.slane %v1924_v60, 1 }
 0x311   :  { %v1930_v46 = vmax.f32 %v1928_v9, %v1929_v30  ;;  %v1947_v12 = vrot.slane %v1946_v24, 2  ;;  %v1628_v26 = vmax.f32 %v1550_v23, 0.0  ;;  %v1943_v49 = vrot.slane %v1942_v1, 1 }
 0x312   :  { %v1965_v33 = vrot.slane %v1964_v54, 2  ;;  %v1952_v36 = vmax.f32 %v1622_v27, %v1951_v20  ;;  %v1981_v37 = vrot.slane %v1627_v31, 4  ;;  %v1960_v34 = vmax.f32 %v1958_v17, %v1959_v51 }
 0x313   :  { %v1931_v39 = vrot.slane %v1930_v46, 1  ;;  %v1948_v40 = vmax.f32 %v1946_v24, %v1947_v12  ;;  %v1969_v41 = vrot.slane %v1625_v18, 4  ;;  %v1926_v32 = vmax.f32 %v1924_v60, %v1925_v25 }
 0x314   :  { %v1966_v43 = vmax.f32 %v1964_v54, %v1965_v33  ;;  %v1953_v47 = vrot.slane %v1952_v36, 2  ;;  %v1987_v50 = vrot.slane %v1628_v26, 4  ;;  %v1938_v52 = vmax.f32 %v1936_v56, %v1937_v7 }
 0x315   :  { %v1932_v16 = vmax.f32 %v1930_v46, %v1931_v39  ;;  %v1949_v48 = vrot.slane %v1948_v40, 1  ;;  %v1944_v53 = vmax.f32 %v1942_v1, %v1943_v49  ;;  %v1982_v15 = vmax.f32 %v1627_v31, %v1981_v37 }
 0x316   :  { %v1954_v55 = vmax.f32 %v1952_v36, %v1953_v47  ;;  %v1961_v45 = vrot.slane %v1960_v34, 1  ;;  %v1970_v58 = vmax.f32 %v1625_v18, %v1969_v41  ;;  %v1967_v61 = vrot.slane %v1966_v43, 1 }
 0x317   :  { %v2130_v44 = vsel %vm2081_vm3, %v1932_v16, %v1926_v32  ;;  %v1950_v57 = vmax.f32 %v1948_v40, %v1949_v48  ;;  %v1988_v38 = vmax.f32 %v1628_v26, %v1987_v50  ;;  %v1542_v60 = vadd.f32 %v3279_v63, %v3272_v35 }
 0x318   :  { %v2131_v59 = vsel %vm2083_vm4, %v1938_v52, %v2130_v44  ;;  %v1955_v0 = vrot.slane %v1954_v55, 1  ;;  %v1983_v4 = vrot.slane %v1982_v15, 2  ;;  %v1563_v7 = vadd.f32 %v3279_v63, %v2597_v13 }
 0x319   :  { %v2132_v42 = vsel %vm2085_vm5, %v1944_v53, %v2131_v59  ;;  %v1962_v5 = vmax.f32 %v1960_v34, %v1961_v45  ;;  %v1971_v62 = vrot.slane %v1970_v58, 2  ;;  %v1626_v3 = vmax.f32 %v1542_v60, 0.0 }
 0x31a   :  { %v2133_v56 = vsel %vm2087_vm6, %v1950_v57, %v2132_v42  ;;  %v1956_v1 = vmax.f32 %v1954_v55, %v1955_v0  ;;  %v1555_v8 = vadd.f32 %v3279_v63, %v1554_v21  ;;  %v1968_v10 = vmax.f32 %v1966_v43, %v1967_v61 }
 0x31b   :  { %v1631_v14 = vmax.f32 %v1563_v7, 0.0  ;;  %v1566_v9 = vadd.f32 %v3279_v63, %v2598_v29  ;;  %v1989_v35 = vrot.slane %v1988_v38, 2  ;;  %v1975_v19 = vrot.slane %v1626_v3, 4 }
 0x31c   :  { %v2134_v11 = vsel %vm2089_vm7, %v1956_v1, %v2133_v56  ;;  %v1629_v17 = vmax.f32 %v1555_v8, 0.0  ;;  %v1558_v28 = vadd.f32 %v3279_v63, %v1557_v22  ;;  %v1972_v30 = vmax.f32 %v1970_v58, %v1971_v62 }
 0x31d   :  { %v2135_v2 = vsel %vm2091_vm8, %v1962_v5, %v2134_v11  ;;  %v2005_v27 = vrot.slane %v1631_v14, 4  ;;  %v1632_v13 = vmax.f32 %v1566_v9, 0.0  ;;  %v1976_v21 = vmax.f32 %v1626_v3, %v1975_v19 }
 0x31e   :  { %v2136_v6 = vsel %vm2093_vm9, %v1968_v10, %v2135_v2  ;;  %v1993_v24 = vrot.slane %v1629_v17, 4  ;;  %v1984_v31 = vmax.f32 %v1982_v15, %v1983_v4  ;;  %v1630_v54 = vmax.f32 %v1558_v28, 0.0 }
 0x31f   :  { %2158 = vst [vmem:[#allocation2 + $0x30] sm:$0xff] %v2136_v6  ;;  %v2006_v23 = vmax.f32 %v1631_v14, %v2005_v27  ;;  %v2011_v51 = vrot.slane %v1632_v13, 4  ;;  %v1990_v29 = vmax.f32 %v1988_v38, %v1989_v35  ;;  %v1977_v20 = vrot.slane %v1976_v21, 2 }
 0x320   :  { %v1994_v18 = vmax.f32 %v1629_v17, %v1993_v24  ;;  %v1999_v12 = vrot.slane %v1630_v54, 4  ;;  %v1973_v26 = vrot.slane %v1972_v30, 1  ;;  %v1985_v36 = vrot.slane %v1984_v31, 1 }
 0x321   :  { %v2007_v25 = vrot.slane %v2006_v23, 2  ;;  %v2012_v46 = vmax.f32 %v1632_v13, %v2011_v51  ;;  %v1978_v49 = vmax.f32 %v1976_v21, %v1977_v20  ;;  %v1991_v22 = vrot.slane %v1990_v29, 1 }
 0x322   :  { %v1995_v33 = vrot.slane %v1994_v18, 2  ;;  %v2000_v63 = vmax.f32 %v1630_v54, %v1999_v12  ;;  %v1974_v47 = vmax.f32 %v1972_v30, %v1973_v26  ;;  %v1986_v48 = vmax.f32 %v1984_v31, %v1985_v36 }
 0x323   :  { %v2013_v37 = vrot.slane %v2012_v46, 2  ;;  %v1979_v39 = vrot.slane %v1978_v49, 1  ;;  %v2008_v34 = vmax.f32 %v2006_v23, %v2007_v25  ;;  %v1992_v52 = vmax.f32 %v1990_v29, %v1991_v22 }
 0x324   :  { %v1996_v40 = vmax.f32 %v1994_v18, %v1995_v33  ;;  %v2001_v43 = vrot.slane %v2000_v63, 2 }
 0x325   :  { %v2014_v41 = vmax.f32 %v2012_v46, %v2013_v37  ;;  %v1980_v32 = vmax.f32 %v1978_v49, %v1979_v39  ;;  %v2009_v55 = vrot.slane %v2008_v34, 1 }
 0x326   :  { %v1997_v16 = vrot.slane %v1996_v40, 1  ;;  %v2002_v50 = vmax.f32 %v2000_v63, %v2001_v43 }
 0x327   :  { %v2137_v53 = vsel %vm2081_vm3, %v1980_v32, %v1974_v47  ;;  %v2015_v45 = vrot.slane %v2014_v41, 1  ;;  %v2010_v0 = vmax.f32 %v2008_v34, %v2009_v55 }
 0x328   :  { %v1998_v15 = vmax.f32 %v1996_v40, %v1997_v16  ;;  %v2138_v44 = vsel %vm2083_vm4, %v1986_v48, %v2137_v53  ;;  %v2003_v57 = vrot.slane %v2002_v50, 1 }
 0x329   :  { %v2139_v58 = vsel %vm2085_vm5, %v1992_v52, %v2138_v44  ;;  %v2016_v42 = vmax.f32 %v2014_v41, %v2015_v45 }
 0x32a   :  { %v2140_v59 = vsel %vm2087_vm6, %v1998_v15, %v2139_v58  ;;  %v2004_v61 = vmax.f32 %v2002_v50, %v2003_v57 }
 0x32c   :  { %v2141_v38 = vsel %vm2089_vm7, %v2004_v61, %v2140_v59 }
 0x32d   :  { %v2142_v60 = vsel %vm2091_vm8, %v2010_v0, %v2141_v38 }
 0x32e   :  { %v2143_v56 = vsel %vm2093_vm9, %v2016_v42, %v2142_v60 }
 0x32f   :  { %2159 = vst [vmem:[#allocation2 + $0x38] sm:$0xff] %v2143_v56 }
 0x330   :  { %2627 = shalt.err (!%p2624_p4)
}
 0x331   :  { %s2628_s8 = scalar_lea.hbm %s3329_s7, 1024 }
 0x332   :  { %p2629_p5 = scmp.ne.s32.totalorder %s3329_s7, %s2628_s8  ;;  %p2632_p6 = scmp.lt.u32.totalorder %s2628_s8, %s3329_s7 }
 0x334   :  { %p2634_p7 = pnand %p2632_p6, %p2629_p5 }
 0x336   :  { %2637 = shalt.err (!%p2634_p7)
}
 0x337   :  { %s2641_s12 = smov 128   ;;  %s2642_s13 = smov 8  }
 0x338   :  { %2171 = dma.vmem_to_hbm [thread:$0]  %s2166_s27, 1024, %s3329_s7, [#allocation3], %s2641_s12, %s2641_s12, %s2642_s13  }
 0x339   :  { %2638 = dma.done.wait [#allocation3], 1024  }
 0x33a   :  { %2639 = vsyncadd [#allocation3], 4294966272 }
 0x33b   :  { %2175 = vsyncpa [#allocation3], 1 }

</bundles_post_ra>
